<compile_context>
chip_gen: v5e
topology: v5e:2x2
jax: 0.10.0
libtpu: 0.0.40
codegen_flags: <defaults>
</compile_context>

<pallas_src>
import itertools

import numpy as np
import jax
import jax.numpy as jnp
from jax import lax
from jax.experimental import pallas as pl
from jax.experimental.pallas import tpu as pltpu


# ---------------------------------------------------------------------------
# Kernel: one (batch, output-pixel-tile) block of the warp.
# ---------------------------------------------------------------------------
def _make_sampler_kernel(size, C, S, PT):
    ndim = len(size)
    size = tuple(int(s) for s in size)
    # Row-major strides of the flattened spatial index.
    strides = [1] * ndim
    for i in range(ndim - 2, -1, -1):
        strides[i] = strides[i + 1] * size[i + 1]

    def kernel(grid_ref, flow_ref, src_ref, out_ref):
        # grid_ref: (ndim, PT) identity grid (the module's registered buffer)
        # flow_ref: (ndim, PT) displacement field tile
        # src_ref : (C, S)    whole (flattened) source volume for this batch
        # out_ref : (C, PT)   output tile (lane-dense, NC<spatial> layout)
        g = grid_ref[...]
        f = flow_ref[...]

        lo, w_lo, w_hi = [], [], []
        for i in range(ndim):
            c = g[i:i + 1, :] + f[i:i + 1, :]            # (1, PT) pixel coord
            c = 2.0 * (c / (size[i] - 1) - 0.5)          # module's normalization
            c = (c + 1.0) * 0.5 * (size[i] - 1)          # grid_sample unnormalize
            f0 = jnp.floor(c)                            # (align_corners=True)
            lo.append(f0.astype(jnp.int32))
            w_hi.append(c - f0)
            w_lo.append(1.0 - (c - f0))

        # Build the one-hot interpolation weight matrix Wt[q, p] = weight of
        # source pixel q contributing to output pixel p.  q on sublanes,
        # p (=PT, multiple of 128) lane-dense.
        q_iota = lax.broadcasted_iota(jnp.int32, (S, PT), 0)
        wt = jnp.zeros((S, PT), jnp.float32)
        for corner in itertools.product((0, 1), repeat=ndim):
            idx = jnp.zeros_like(lo[0])
            w = jnp.ones_like(w_lo[0])
            inb = None
            for i, hi in enumerate(corner):
                ci = lo[i] + hi
                w = w * (w_hi[i] if hi else w_lo[i])
                m = (ci >= 0) & (ci < size[i])
                inb = m if inb is None else (inb & m)
                idx = idx + ci * strides[i]
            w = jnp.where(inb, w, 0.0)                   # zeros padding outside
            wt = wt + jnp.where(q_iota == idx, w, 0.0)

        # Gather-as-matmul on the MXU: (C, S) @ (S, PT) -> (C, PT), f32 accum.
        out_ref[...] = jnp.dot(src_ref[...], wt,
                               preferred_element_type=jnp.float32)

    return kernel


# ---------------------------------------------------------------------------
# Wrapper: SpatialTransformer.forward  (src, flow in PyTorch NC<spatial> layout)
# ---------------------------------------------------------------------------
def spatial_transformer(src, flow, *, mode="bilinear"):
    """Warp `src` by dense displacement `flow` (PyTorch SpatialTransformer).

    src : (N, C, *size)
    flow: (N, ndim, *size)
    returns: (N, C, *size)
    """
    if mode != "bilinear":
        # TODO(synk): mode='nearest' (single rounded tap) not implemented.
        raise NotImplementedError("only mode='bilinear' is supported")

    N, C = int(src.shape[0]), int(src.shape[1])
    size = tuple(int(s) for s in src.shape[2:])
    ndim = len(size)
    assert flow.shape == (N, ndim) + size, (flow.shape, (N, ndim) + size)
    S = int(np.prod(size))

    # Output-pixel tile: biggest multiple of 128 dividing S whose (S, PT)
    # weight slab stays well under every generation's scoped-VMEM budget.
    PT = S
    for cand in (512, 256, 128):
        if S % cand == 0 and S * cand * 4 <= 8 * 1024 * 1024:
            PT = cand
            break

    # The module's registered identity grid, flattened: (ndim, S).
    mesh = jnp.stack(jnp.meshgrid(
        *[jnp.arange(s, dtype=jnp.float32) for s in size], indexing="ij"))
    grid_flat = mesh.reshape(ndim, S)
    src_flat = src.reshape(N, C, S).astype(jnp.float32)
    flow_flat = flow.reshape(N, ndim, S).astype(jnp.float32)

    kernel = _make_sampler_kernel(size, C, S, PT)
    out_flat = pl.pallas_call(
        kernel,
        out_shape=jax.ShapeDtypeStruct((N, C, S), jnp.float32),
        grid_spec=pltpu.PrefetchScalarGridSpec(
            num_scalar_prefetch=0,
            grid=(N, S // PT),
            in_specs=[
                # identity grid tile (constant across batch)
                pl.BlockSpec((ndim, PT), lambda n, p: (0, p)),
                # flow tile for this (batch, pixel-tile)
                pl.BlockSpec((None, ndim, PT), lambda n, p: (n, 0, p)),
                # whole source volume for this batch (resident across p-tiles)
                pl.BlockSpec((None, C, S), lambda n, p: (n, 0, 0)),
            ],
            out_specs=pl.BlockSpec((None, C, PT), lambda n, p: (n, 0, p)),
        ),
        compiler_params=pltpu.CompilerParams(
            dimension_semantics=("parallel", "parallel"),
            vmem_limit_bytes=32 * 1024 * 1024,
        ),
    )(grid_flat, flow_flat, src_flat)

    return out_flat.reshape((N, C) + size)


# ---------------------------------------------------------------------------
# Pure-JAX reference (mirrors the PyTorch module + nnf.grid_sample,
# bilinear/trilinear, align_corners=True, padding_mode='zeros').
# Implemented with per-corner gathers (independent mechanism from the kernel).
# ---------------------------------------------------------------------------
def _reference(src, flow):
    N, C = int(src.shape[0]), int(src.shape[1])
    size = tuple(int(s) for s in src.shape[2:])
    ndim = len(size)
    S = int(np.prod(size))

    mesh = jnp.stack(jnp.meshgrid(
        *[jnp.arange(s, dtype=jnp.float32) for s in size], indexing="ij"))
    new_locs = mesh[None] + flow.astype(jnp.float32)      # (N, ndim, *size)

    coords = []
    for i in range(ndim):
        nrm = 2.0 * (new_locs[:, i] / (size[i] - 1) - 0.5)   # module normalization
        coords.append((nrm + 1.0) * 0.5 * (size[i] - 1))     # unnormalize (align_corners)

    strides = [1] * ndim
    for i in range(ndim - 2, -1, -1):
        strides[i] = strides[i + 1] * size[i + 1]

    src_flat = src.reshape(N, C, S).astype(jnp.float32)
    lo = [jnp.floor(c) for c in coords]
    out = jnp.zeros((N, C, S), jnp.float32)
    for corner in itertools.product((0, 1), repeat=ndim):
        idx = jnp.zeros((N,) + size, jnp.int32)
        w = jnp.ones((N,) + size, jnp.float32)
        inb = jnp.ones((N,) + size, bool)
        for i, hi in enumerate(corner):
            ci = lo[i] + hi
            w = w * ((coords[i] - lo[i]) if hi else (1.0 - (coords[i] - lo[i])))
            inb = inb & (ci >= 0) & (ci < size[i])
            idx = idx + ci.astype(jnp.int32) * strides[i]
        w = jnp.where(inb, w, 0.0).reshape(N, 1, S)
        idx_f = jnp.clip(idx.reshape(N, S), 0, S - 1)
        gathered = jnp.take_along_axis(
            src_flat, jnp.broadcast_to(idx_f[:, None, :], (N, C, S)), axis=2)
        out = out + w * gathered
    return out.reshape((N, C) + size)


if __name__ == "__main__":
    key = jax.random.PRNGKey(0)

    # ---- 2-D case (matches the common SpatialTransformer usage) ----
    N, C, H, W = 2, 4, 16, 16
    k_src, k_flow, k_src3, k_flow3 = jax.random.split(key, 4)
    src2 = jax.random.normal(k_src, (N, C, H, W), dtype=jnp.float32)
    # a few-pixel displacement; some samples land outside -> zeros-padding path
    flow2 = 3.0 * jax.random.normal(k_flow, (N, 2, H, W), dtype=jnp.float32)

    out2 = spatial_transformer(src2, flow2)
    out2 = jax.block_until_ready(out2)
    ref2 = _reference(src2, flow2)
    np.testing.assert_allclose(np.asarray(out2), np.asarray(ref2),
                               rtol=1e-4, atol=1e-4)

    # ---- 3-D case (trilinear) ----
    N3, C3, D3, H3, W3 = 2, 3, 8, 8, 8
    src3 = jax.random.normal(k_src3, (N3, C3, D3, H3, W3), dtype=jnp.float32)
    flow3 = 2.0 * jax.random.normal(k_flow3, (N3, 3, D3, H3, W3),
                                    dtype=jnp.float32)
    out3 = spatial_transformer(src3, flow3)
    out3 = jax.block_until_ready(out3)
    ref3 = _reference(src3, flow3)
    np.testing.assert_allclose(np.asarray(out3), np.asarray(ref3),
                               rtol=1e-4, atol=1e-4)

    print("KERNEL_OK")
</pallas_src>

<mosaic_0001>
module attributes {stable_mosaic.version = 11 : i64} {
  func.func @kernel(%arg0: i32, %arg1: i32, %arg2: memref<2x256xf32, #tpu.memory_space<vmem>>, %arg3: memref<1x2x256xf32, #tpu.memory_space<vmem>>, %arg4: memref<1x4x256xf32, #tpu.memory_space<vmem>>, %arg5: memref<1x4x256xf32, #tpu.memory_space<vmem>>) attributes {dimension_semantics = [#tpu.dimension_semantics<parallel>, #tpu.dimension_semantics<parallel>], iteration_bounds = array<i64: 2, 1>, scalar_prefetch = 0 : i64, scratch_operands = 0 : i64, tpu.core_type = #tpu.core_type<tc>, window_params = [{transform_indices = @transform_0, window_bounds = array<i64: 2, 256>}, {transform_indices = @transform_1, window_bounds = array<i64: 1, 2, 256>}, {transform_indices = @transform_2, window_bounds = array<i64: 1, 4, 256>}, {transform_indices = @transform_3, window_bounds = array<i64: 1, 4, 256>}]} {
    %c0 = arith.constant 0 : index
    %c0_0 = arith.constant 0 : index
    %0 = vector.load %arg2[%c0, %c0_0] : memref<2x256xf32, #tpu.memory_space<vmem>>, vector<2x256xf32>
    %c0_1 = arith.constant 0 : index
    %c0_2 = arith.constant 0 : index
    %c0_3 = arith.constant 0 : index
    %1 = vector.load %arg3[%c0_1, %c0_2, %c0_3] : memref<1x2x256xf32, #tpu.memory_space<vmem>>, vector<1x2x256xf32>
    %2 = vector.shape_cast %1 : vector<1x2x256xf32> to vector<2x256xf32>
    %3 = vector.extract_strided_slice %0 {offsets = [0, 0], sizes = [1, 256], strides = [1, 1]} : vector<2x256xf32> to vector<1x256xf32>
    %4 = vector.extract_strided_slice %2 {offsets = [0, 0], sizes = [1, 256], strides = [1, 1]} : vector<2x256xf32> to vector<1x256xf32>
    %5 = arith.addf %3, %4 : vector<1x256xf32>
    %cst = arith.constant 1.500000e+01 : f32
    %6 = vector.broadcast %cst : f32 to vector<1x256xf32>
    %7 = arith.divf %5, %6 : vector<1x256xf32>
    %cst_4 = arith.constant 5.000000e-01 : f32
    %8 = vector.broadcast %cst_4 : f32 to vector<1x256xf32>
    %9 = arith.subf %7, %8 : vector<1x256xf32>
    %cst_5 = arith.constant 2.000000e+00 : f32
    %10 = vector.broadcast %cst_5 : f32 to vector<1x256xf32>
    %11 = arith.mulf %10, %9 : vector<1x256xf32>
    %cst_6 = arith.constant 1.000000e+00 : f32
    %12 = vector.broadcast %cst_6 : f32 to vector<1x256xf32>
    %13 = arith.addf %11, %12 : vector<1x256xf32>
    %cst_7 = arith.constant 5.000000e-01 : f32
    %14 = vector.broadcast %cst_7 : f32 to vector<1x256xf32>
    %15 = arith.mulf %13, %14 : vector<1x256xf32>
    %cst_8 = arith.constant 1.500000e+01 : f32
    %16 = vector.broadcast %cst_8 : f32 to vector<1x256xf32>
    %17 = arith.mulf %15, %16 : vector<1x256xf32>
    %18 = math.floor %17 : vector<1x256xf32>
    %19 = arith.fptosi %18 : vector<1x256xf32> to vector<1x256xi32>
    %20 = arith.subf %17, %18 : vector<1x256xf32>
    %21 = arith.subf %17, %18 : vector<1x256xf32>
    %cst_9 = arith.constant 1.000000e+00 : f32
    %22 = vector.broadcast %cst_9 : f32 to vector<1x256xf32>
    %23 = arith.subf %22, %21 : vector<1x256xf32>
    %24 = vector.extract_strided_slice %0 {offsets = [1, 0], sizes = [1, 256], strides = [1, 1]} : vector<2x256xf32> to vector<1x256xf32>
    %25 = vector.extract_strided_slice %2 {offsets = [1, 0], sizes = [1, 256], strides = [1, 1]} : vector<2x256xf32> to vector<1x256xf32>
    %26 = arith.addf %24, %25 : vector<1x256xf32>
    %cst_10 = arith.constant 1.500000e+01 : f32
    %27 = vector.broadcast %cst_10 : f32 to vector<1x256xf32>
    %28 = arith.divf %26, %27 : vector<1x256xf32>
    %cst_11 = arith.constant 5.000000e-01 : f32
    %29 = vector.broadcast %cst_11 : f32 to vector<1x256xf32>
    %30 = arith.subf %28, %29 : vector<1x256xf32>
    %cst_12 = arith.constant 2.000000e+00 : f32
    %31 = vector.broadcast %cst_12 : f32 to vector<1x256xf32>
    %32 = arith.mulf %31, %30 : vector<1x256xf32>
    %cst_13 = arith.constant 1.000000e+00 : f32
    %33 = vector.broadcast %cst_13 : f32 to vector<1x256xf32>
    %34 = arith.addf %32, %33 : vector<1x256xf32>
    %cst_14 = arith.constant 5.000000e-01 : f32
    %35 = vector.broadcast %cst_14 : f32 to vector<1x256xf32>
    %36 = arith.mulf %34, %35 : vector<1x256xf32>
    %cst_15 = arith.constant 1.500000e+01 : f32
    %37 = vector.broadcast %cst_15 : f32 to vector<1x256xf32>
    %38 = arith.mulf %36, %37 : vector<1x256xf32>
    %39 = math.floor %38 : vector<1x256xf32>
    %40 = arith.fptosi %39 : vector<1x256xf32> to vector<1x256xi32>
    %41 = arith.subf %38, %39 : vector<1x256xf32>
    %42 = arith.subf %38, %39 : vector<1x256xf32>
    %cst_16 = arith.constant 1.000000e+00 : f32
    %43 = vector.broadcast %cst_16 : f32 to vector<1x256xf32>
    %44 = arith.subf %43, %42 : vector<1x256xf32>
    %45 = tpu.iota {dimensions = array<i32: 0>} : vector<256x256xi32>
    %cst_17 = arith.constant 0.000000e+00 : f32
    %46 = vector.broadcast %cst_17 : f32 to vector<256x256xf32>
    %c0_i32 = arith.constant 0 : i32
    %47 = vector.broadcast %c0_i32 : i32 to vector<1x256xi32>
    %cst_18 = arith.constant 1.000000e+00 : f32
    %48 = vector.broadcast %cst_18 : f32 to vector<1x256xf32>
    %c0_i32_19 = arith.constant 0 : i32
    %49 = vector.broadcast %c0_i32_19 : i32 to vector<1x256xi32>
    %50 = arith.addi %19, %49 : vector<1x256xi32>
    %51 = arith.mulf %48, %23 : vector<1x256xf32>
    %c0_i32_20 = arith.constant 0 : i32
    %52 = vector.broadcast %c0_i32_20 : i32 to vector<1x256xi32>
    %53 = arith.cmpi sge, %50, %52 : vector<1x256xi32>
    %c16_i32 = arith.constant 16 : i32
    %54 = vector.broadcast %c16_i32 : i32 to vector<1x256xi32>
    %55 = arith.cmpi slt, %50, %54 : vector<1x256xi32>
    %56 = arith.andi %53, %55 : vector<1x256xi1>
    %c16_i32_21 = arith.constant 16 : i32
    %57 = vector.broadcast %c16_i32_21 : i32 to vector<1x256xi32>
    %58 = arith.muli %50, %57 : vector<1x256xi32>
    %59 = arith.addi %47, %58 : vector<1x256xi32>
    %c0_i32_22 = arith.constant 0 : i32
    %60 = vector.broadcast %c0_i32_22 : i32 to vector<1x256xi32>
    %61 = arith.addi %40, %60 : vector<1x256xi32>
    %62 = arith.mulf %51, %44 : vector<1x256xf32>
    %c0_i32_23 = arith.constant 0 : i32
    %63 = vector.broadcast %c0_i32_23 : i32 to vector<1x256xi32>
    %64 = arith.cmpi sge, %61, %63 : vector<1x256xi32>
    %c16_i32_24 = arith.constant 16 : i32
    %65 = vector.broadcast %c16_i32_24 : i32 to vector<1x256xi32>
    %66 = arith.cmpi slt, %61, %65 : vector<1x256xi32>
    %67 = arith.andi %64, %66 : vector<1x256xi1>
    %68 = arith.andi %56, %67 : vector<1x256xi1>
    %c1_i32 = arith.constant 1 : i32
    %69 = vector.broadcast %c1_i32 : i32 to vector<1x256xi32>
    %70 = arith.muli %61, %69 : vector<1x256xi32>
    %71 = arith.addi %59, %70 : vector<1x256xi32>
    %cst_25 = arith.constant 0.000000e+00 : f32
    %72 = vector.broadcast %cst_25 : f32 to vector<1x256xf32>
    %73 = arith.select %68, %62, %72 : vector<1x256xi1>, vector<1x256xf32>
    %74 = vector.broadcast %71 : vector<1x256xi32> to vector<256x256xi32>
    %75 = arith.cmpi eq, %45, %74 : vector<256x256xi32>
    %cst_26 = arith.constant 0.000000e+00 : f32
    %76 = vector.shape_cast %73 : vector<1x256xf32> to vector<1x256xf32>
    %77 = vector.broadcast %76 : vector<1x256xf32> to vector<256x256xf32>
    %78 = vector.broadcast %cst_26 : f32 to vector<256x256xf32>
    %79 = arith.select %75, %77, %78 : vector<256x256xi1>, vector<256x256xf32>
    %80 = arith.addf %46, %79 : vector<256x256xf32>
    %c0_i32_27 = arith.constant 0 : i32
    %81 = vector.broadcast %c0_i32_27 : i32 to vector<1x256xi32>
    %cst_28 = arith.constant 1.000000e+00 : f32
    %82 = vector.broadcast %cst_28 : f32 to vector<1x256xf32>
    %c0_i32_29 = arith.constant 0 : i32
    %83 = vector.broadcast %c0_i32_29 : i32 to vector<1x256xi32>
    %84 = arith.addi %19, %83 : vector<1x256xi32>
    %85 = arith.mulf %82, %23 : vector<1x256xf32>
    %c0_i32_30 = arith.constant 0 : i32
    %86 = vector.broadcast %c0_i32_30 : i32 to vector<1x256xi32>
    %87 = arith.cmpi sge, %84, %86 : vector<1x256xi32>
    %c16_i32_31 = arith.constant 16 : i32
    %88 = vector.broadcast %c16_i32_31 : i32 to vector<1x256xi32>
    %89 = arith.cmpi slt, %84, %88 : vector<1x256xi32>
    %90 = arith.andi %87, %89 : vector<1x256xi1>
    %c16_i32_32 = arith.constant 16 : i32
    %91 = vector.broadcast %c16_i32_32 : i32 to vector<1x256xi32>
    %92 = arith.muli %84, %91 : vector<1x256xi32>
    %93 = arith.addi %81, %92 : vector<1x256xi32>
    %c1_i32_33 = arith.constant 1 : i32
    %94 = vector.broadcast %c1_i32_33 : i32 to vector<1x256xi32>
    %95 = arith.addi %40, %94 : vector<1x256xi32>
    %96 = arith.mulf %85, %41 : vector<1x256xf32>
    %c0_i32_34 = arith.constant 0 : i32
    %97 = vector.broadcast %c0_i32_34 : i32 to vector<1x256xi32>
    %98 = arith.cmpi sge, %95, %97 : vector<1x256xi32>
    %c16_i32_35 = arith.constant 16 : i32
    %99 = vector.broadcast %c16_i32_35 : i32 to vector<1x256xi32>
    %100 = arith.cmpi slt, %95, %99 : vector<1x256xi32>
    %101 = arith.andi %98, %100 : vector<1x256xi1>
    %102 = arith.andi %90, %101 : vector<1x256xi1>
    %c1_i32_36 = arith.constant 1 : i32
    %103 = vector.broadcast %c1_i32_36 : i32 to vector<1x256xi32>
    %104 = arith.muli %95, %103 : vector<1x256xi32>
    %105 = arith.addi %93, %104 : vector<1x256xi32>
    %cst_37 = arith.constant 0.000000e+00 : f32
    %106 = vector.broadcast %cst_37 : f32 to vector<1x256xf32>
    %107 = arith.select %102, %96, %106 : vector<1x256xi1>, vector<1x256xf32>
    %108 = vector.broadcast %105 : vector<1x256xi32> to vector<256x256xi32>
    %109 = arith.cmpi eq, %45, %108 : vector<256x256xi32>
    %cst_38 = arith.constant 0.000000e+00 : f32
    %110 = vector.shape_cast %107 : vector<1x256xf32> to vector<1x256xf32>
    %111 = vector.broadcast %110 : vector<1x256xf32> to vector<256x256xf32>
    %112 = vector.broadcast %cst_38 : f32 to vector<256x256xf32>
    %113 = arith.select %109, %111, %112 : vector<256x256xi1>, vector<256x256xf32>
    %114 = arith.addf %80, %113 : vector<256x256xf32>
    %c0_i32_39 = arith.constant 0 : i32
    %115 = vector.broadcast %c0_i32_39 : i32 to vector<1x256xi32>
    %cst_40 = arith.constant 1.000000e+00 : f32
    %116 = vector.broadcast %cst_40 : f32 to vector<1x256xf32>
    %c1_i32_41 = arith.constant 1 : i32
    %117 = vector.broadcast %c1_i32_41 : i32 to vector<1x256xi32>
    %118 = arith.addi %19, %117 : vector<1x256xi32>
    %119 = arith.mulf %116, %20 : vector<1x256xf32>
    %c0_i32_42 = arith.constant 0 : i32
    %120 = vector.broadcast %c0_i32_42 : i32 to vector<1x256xi32>
    %121 = arith.cmpi sge, %118, %120 : vector<1x256xi32>
    %c16_i32_43 = arith.constant 16 : i32
    %122 = vector.broadcast %c16_i32_43 : i32 to vector<1x256xi32>
    %123 = arith.cmpi slt, %118, %122 : vector<1x256xi32>
    %124 = arith.andi %121, %123 : vector<1x256xi1>
    %c16_i32_44 = arith.constant 16 : i32
    %125 = vector.broadcast %c16_i32_44 : i32 to vector<1x256xi32>
    %126 = arith.muli %118, %125 : vector<1x256xi32>
    %127 = arith.addi %115, %126 : vector<1x256xi32>
    %c0_i32_45 = arith.constant 0 : i32
    %128 = vector.broadcast %c0_i32_45 : i32 to vector<1x256xi32>
    %129 = arith.addi %40, %128 : vector<1x256xi32>
    %130 = arith.mulf %119, %44 : vector<1x256xf32>
    %c0_i32_46 = arith.constant 0 : i32
    %131 = vector.broadcast %c0_i32_46 : i32 to vector<1x256xi32>
    %132 = arith.cmpi sge, %129, %131 : vector<1x256xi32>
    %c16_i32_47 = arith.constant 16 : i32
    %133 = vector.broadcast %c16_i32_47 : i32 to vector<1x256xi32>
    %134 = arith.cmpi slt, %129, %133 : vector<1x256xi32>
    %135 = arith.andi %132, %134 : vector<1x256xi1>
    %136 = arith.andi %124, %135 : vector<1x256xi1>
    %c1_i32_48 = arith.constant 1 : i32
    %137 = vector.broadcast %c1_i32_48 : i32 to vector<1x256xi32>
    %138 = arith.muli %129, %137 : vector<1x256xi32>
    %139 = arith.addi %127, %138 : vector<1x256xi32>
    %cst_49 = arith.constant 0.000000e+00 : f32
    %140 = vector.broadcast %cst_49 : f32 to vector<1x256xf32>
    %141 = arith.select %136, %130, %140 : vector<1x256xi1>, vector<1x256xf32>
    %142 = vector.broadcast %139 : vector<1x256xi32> to vector<256x256xi32>
    %143 = arith.cmpi eq, %45, %142 : vector<256x256xi32>
    %cst_50 = arith.constant 0.000000e+00 : f32
    %144 = vector.shape_cast %141 : vector<1x256xf32> to vector<1x256xf32>
    %145 = vector.broadcast %144 : vector<1x256xf32> to vector<256x256xf32>
    %146 = vector.broadcast %cst_50 : f32 to vector<256x256xf32>
    %147 = arith.select %143, %145, %146 : vector<256x256xi1>, vector<256x256xf32>
    %148 = arith.addf %114, %147 : vector<256x256xf32>
    %c0_i32_51 = arith.constant 0 : i32
    %149 = vector.broadcast %c0_i32_51 : i32 to vector<1x256xi32>
    %cst_52 = arith.constant 1.000000e+00 : f32
    %150 = vector.broadcast %cst_52 : f32 to vector<1x256xf32>
    %c1_i32_53 = arith.constant 1 : i32
    %151 = vector.broadcast %c1_i32_53 : i32 to vector<1x256xi32>
    %152 = arith.addi %19, %151 : vector<1x256xi32>
    %153 = arith.mulf %150, %20 : vector<1x256xf32>
    %c0_i32_54 = arith.constant 0 : i32
    %154 = vector.broadcast %c0_i32_54 : i32 to vector<1x256xi32>
    %155 = arith.cmpi sge, %152, %154 : vector<1x256xi32>
    %c16_i32_55 = arith.constant 16 : i32
    %156 = vector.broadcast %c16_i32_55 : i32 to vector<1x256xi32>
    %157 = arith.cmpi slt, %152, %156 : vector<1x256xi32>
    %158 = arith.andi %155, %157 : vector<1x256xi1>
    %c16_i32_56 = arith.constant 16 : i32
    %159 = vector.broadcast %c16_i32_56 : i32 to vector<1x256xi32>
    %160 = arith.muli %152, %159 : vector<1x256xi32>
    %161 = arith.addi %149, %160 : vector<1x256xi32>
    %c1_i32_57 = arith.constant 1 : i32
    %162 = vector.broadcast %c1_i32_57 : i32 to vector<1x256xi32>
    %163 = arith.addi %40, %162 : vector<1x256xi32>
    %164 = arith.mulf %153, %41 : vector<1x256xf32>
    %c0_i32_58 = arith.constant 0 : i32
    %165 = vector.broadcast %c0_i32_58 : i32 to vector<1x256xi32>
    %166 = arith.cmpi sge, %163, %165 : vector<1x256xi32>
    %c16_i32_59 = arith.constant 16 : i32
    %167 = vector.broadcast %c16_i32_59 : i32 to vector<1x256xi32>
    %168 = arith.cmpi slt, %163, %167 : vector<1x256xi32>
    %169 = arith.andi %166, %168 : vector<1x256xi1>
    %170 = arith.andi %158, %169 : vector<1x256xi1>
    %c1_i32_60 = arith.constant 1 : i32
    %171 = vector.broadcast %c1_i32_60 : i32 to vector<1x256xi32>
    %172 = arith.muli %163, %171 : vector<1x256xi32>
    %173 = arith.addi %161, %172 : vector<1x256xi32>
    %cst_61 = arith.constant 0.000000e+00 : f32
    %174 = vector.broadcast %cst_61 : f32 to vector<1x256xf32>
    %175 = arith.select %170, %164, %174 : vector<1x256xi1>, vector<1x256xf32>
    %176 = vector.broadcast %173 : vector<1x256xi32> to vector<256x256xi32>
    %177 = arith.cmpi eq, %45, %176 : vector<256x256xi32>
    %cst_62 = arith.constant 0.000000e+00 : f32
    %178 = vector.shape_cast %175 : vector<1x256xf32> to vector<1x256xf32>
    %179 = vector.broadcast %178 : vector<1x256xf32> to vector<256x256xf32>
    %180 = vector.broadcast %cst_62 : f32 to vector<256x256xf32>
    %181 = arith.select %177, %179, %180 : vector<256x256xi1>, vector<256x256xf32>
    %182 = arith.addf %148, %181 : vector<256x256xf32>
    %c0_63 = arith.constant 0 : index
    %c0_64 = arith.constant 0 : index
    %c0_65 = arith.constant 0 : index
    %183 = vector.load %arg4[%c0_63, %c0_64, %c0_65] : memref<1x4x256xf32, #tpu.memory_space<vmem>>, vector<1x4x256xf32>
    %184 = vector.shape_cast %183 : vector<1x4x256xf32> to vector<4x256xf32>
    %cst_66 = arith.constant dense<0.000000e+00> : vector<4x256xf32>
    %185 = tpu.matmul %184, %182, %cst_66 {dimension_numbers = #tpu.dot_dimension_numbers<[1], [0], [0], [1], [0, 0, 1, 1], [], []>} : vector<4x256xf32>, vector<256x256xf32>, vector<4x256xf32> -> vector<4x256xf32>
    %c0_67 = arith.constant 0 : index
    %c0_68 = arith.constant 0 : index
    %c0_69 = arith.constant 0 : index
    %186 = vector.load %arg5[%c0_67, %c0_68, %c0_69] : memref<1x4x256xf32, #tpu.memory_space<vmem>>, vector<1x4x256xf32>
    %187 = vector.shape_cast %186 : vector<1x4x256xf32> to vector<4x256xf32>
    %188 = vector.shape_cast %185 : vector<4x256xf32> to vector<1x4x256xf32>
    tpu.vector_store %arg5[%c0_67, %c0_68, %c0_69], %188 {strides = array<i32>} : memref<1x4x256xf32, #tpu.memory_space<vmem>>, vector<1x4x256xf32>,
    return
  }
  func.func @transform_0(%arg0: i32, %arg1: i32) -> (i32, i32) {
    %c0_i32 = arith.constant 0 : i32
    %c0_i32_0 = arith.constant 0 : i32
    return %c0_i32, %arg1 : i32, i32
  }
  func.func @transform_1(%arg0: i32, %arg1: i32) -> (i32, i32, i32) {
    %c0_i32 = arith.constant 0 : i32
    %c0_i32_0 = arith.constant 0 : i32
    return %arg0, %c0_i32, %arg1 : i32, i32, i32
  }
  func.func @transform_2(%arg0: i32, %arg1: i32) -> (i32, i32, i32) {
    %c0_i32 = arith.constant 0 : i32
    %c0_i32_0 = arith.constant 0 : i32
    %c0_i32_1 = arith.constant 0 : i32
    return %arg0, %c0_i32, %c0_i32_0 : i32, i32, i32
  }
  func.func @transform_3(%arg0: i32, %arg1: i32) -> (i32, i32, i32) {
    %c0_i32 = arith.constant 0 : i32
    %c0_i32_0 = arith.constant 0 : i32
    return %arg0, %c0_i32, %arg1 : i32, i32, i32
  }
}

</mosaic_0001>

<bundles_post_ra>
// kernel: tpu_custom_call.1
= control target key start
LH: loop header
LB: loop body
LE: loop exit
PB: predicated region body
PF: predicated region fallthrough
CT: control target
= control target key end

     0   :  { %8 = vsyncpa [#allocation3], 0  ;;  %s2913_s0 = inlined_call_operand.hbm [shape: f32[2,256], index: 0, kind: input, shape index: {}]   ;;  %s2914_s1 = inlined_call_operand.hbm [shape: f32[2,2,256], index: 1, kind: input, shape index: {}]   ;;  %s2915_s2 = inlined_call_operand.hbm [shape: f32[2,4,256], index: 2, kind: input, shape index: {}]   ;;  %s2916_s3 = inlined_call_operand.hbm [shape: f32[2,4,256], index: 3, kind: output, shape index: {}]  }
   0x1   :  { %9 = vsyncpa [#allocation6], 0 }
   0x2   :  { %11 = vsyncpa [#allocation6 + $0x1], 0 }
   0x3   :  { %12 = vsyncpa [#allocation4], 0 }
   0x4   :  { %14 = vsyncpa [#allocation4 + $0x1], 0  ;;  %s1723_s12 = smov 0   ;;  %s1725_s13 = smov 0  }
   0x5   :  { %s1727_s14 = smov 0   ;;  %s1729_s15 = smov 0  }
   0x6   :  { %s1731_s16 = smov 0   ;;  %s1733_s17 = smov 0  }
   0x7 LB: > { %s32_s18 = sadd.s32 1, %s1694_s16  ;;  %s67_s19 = sadd.s32 1, %s1686_s14  ;;  %s1698_s17 = sphi %s1733_s17, %s20_s17   ;;  %s1694_s16 = sphi %s1731_s16, %s2935_s16   ;;  %s1690_s15 = sphi %s1729_s15, %s2934_s15   ;;  %s1686_s14 = sphi %s1727_s14, %s2933_s14   ;;  %s1682_s13 = sphi %s1725_s13, %s2932_s13   ;;  %s1678_s12 = sphi %s1723_s12, %s2931_s12  }
   0x8   : > { %p34_p0 = scmp.ge.s32.totalorder %s32_s18, 2  ;;  %p74_p1 = scmp.ne.s32.totalorder %s1686_s14, %s1682_s13 }
   0x9   : > { %p75_p2 = scmp.eq.s32.totalorder %s1698_s17, 0  ;;  %p1415_p3 = scmp.ge.s32.totalorder %s1698_s17, 2 }
   0xa   : > { %s2937_s18 = smov (%p34_p0, %s32_s18), 0  ;;  %p1466_p5 = scmp.lt.s32.totalorder %s1698_s17, 2 }
   0xb   : > { %p1764_p4 = por %p75_p2, %p74_p1  ;;  %s62_s21 = ssub.s32 %s1694_s16, %s2937_s18 }
   0xc   : > { %s173_s22 = sand.u32 1, %s1698_s17   ;;  %p65_p6 = scmp.eq.s32.totalorder %s62_s21, 0 }
   0xd   : > { %s175_s23 = sand.u32 1, %s1686_s14   ;;  %s1435_s24 = sshll.u32 %s1694_s16, 2 }
   0xe   : > { %s1775_s25 = scalar_select %p65_p6, %s1686_s14, %s67_s19  }
   0xf   : > { %s1416_s26 = sshll.u32 %s175_s23, 2  ;;  %s184_s29 = scalar_lea.hbm %s2914_s1, %s1435_s24 }
  0x10   : > { %s186_s30 = sshll.u32 %s184_s29, 4  ;;  %s177_s4 = scalar_lea.vmem [#allocation5], %s1416_s26  ;;  %s187_s30 = int_to_ptr.hbm [resolvable:$true] %s186_s30 }
  0x11   : > { %s188_s5 = sshll.u32 %s177_s4, 4  ;;  %p1784_p7 = pnand %p1466_p5, %p1764_p4  ;;  %s189_s5 = int_to_ptr.vmem [resolvable:$true] %s188_s5 }
  0x12   : > { %s1419_s7 = sshll.u32 %s175_s23, 3  ;;  %s1788_s8 = scalar_lea.sflag [#allocation6], %s173_s22 }
  0x13   : > { %1457 = dma.hbm_to_vmem [thread:$0]  (!%p1784_p7), %s187_s30, 64, %s189_s5, %s1788_s8  }
  0x14   : > { %s1794_s9 = sadd.s32 4294967295, %s1698_s17   ;;  %s1412_s10 = sadd.s32 4294967294, %s1698_s17  }
  0x15   : > { %p80_p8 = scmp.ne.s32.totalorder %s1682_s13, %s1678_s12  ;;  %p81_p9 = scmp.eq.s32.totalorder %s1794_s9, 0 }
  0x16   : > { %p132_p10 = scmp.eq.s32.totalorder %s1794_s9, 1  ;;  %p138_p11 = scmp.eq.s32.totalorder %s1412_s10, 1 }
  0x17   : > { %p1803_p12 = por %p81_p9, %p80_p8  ;;  %p1413_p13 = scmp.ge.s32.totalorder %s1698_s17, 1 }
  0x18   : > { %p1811_p0 = por %p132_p10, %p74_p1  ;;  %p1815_p2 = por %p138_p11, %p80_p8 }
  0x19   : > { %p145_p4 = scmp.lt.s32.totalorder %s1698_s17, 3  ;;  %s160_s23 = sshll.u32 %s2913_s0, 4  ;;  %s161_s23 = int_to_ptr.hbm [resolvable:$true] %s160_s23 }
  0x1a   : > { %s1700_s26 = smov [#allocation2]   ;;  %s1436_s28 = sshll.u32 %s1694_s16, 3 }
  0x1b   : > { %p1823_p5 = pnand %p1413_p13, %p145_p4  ;;  %s162_s27 = sshll.u32 %s1700_s26, 4  ;;  %s163_s27 = int_to_ptr.vmem [resolvable:$true] %s162_s27 }
  0x1c   : > { %s199_s29 = scalar_lea.vmem [#allocation7], %s1419_s7  ;;  %s204_s10 = scalar_lea.hbm %s2915_s2, %s1436_s28 }
  0x1d   : > { %p1450_p1 = pneg %p1823_p5  ;;  %s208_s30 = sshll.u32 %s199_s29, 4  ;;  %s209_s30 = int_to_ptr.vmem [resolvable:$true] %s208_s30 }
  0x1e   : > { %s206_s21 = sshll.u32 %s204_s10, 4  ;;  %217 = sbr.rel (%p1823_p5) target bundleno = 409 (0x199), region = 32  ;;  %s207_s21 = int_to_ptr.hbm [resolvable:$true] %s206_s21 }
  0x1f   : > { %p1451_p6 = pnand %p1450_p1, %p81_p9 }
  0x20   : > { %1460 = dma.hbm_to_vmem [thread:$0]  (!%p1784_p7), %s207_s21, 128, %s209_s30, %s1788_s8  }
  0x21   : > { %1453 = dma.hbm_to_vmem [thread:$0]  (!%p1451_p6), %s161_s23, 64, %s163_s27, [#allocation3]  }
  0x23   : > { %1665 = dma.done.wait (%p81_p9), [#allocation3], 64  }
  0x24   : > { %1667 = vsyncadd (%p81_p9), [#allocation3], 4294967232  ;;  %s224_s7 = sand.u32 1, %s1794_s9   ;;  %s1846_s22 = sand.u32 1, %s1682_s13  }
  0x25   : > { %s1424_s26 = sshll.u32 %s1846_s22, 2  ;;  %s225_s23 = scalar_lea.sflag [#allocation6], %s224_s7 }
  0x26   : > { %s228_s6 = scalar_lea.vmem [#allocation5], %s1424_s26 }
  0x27   : > { %1669 = dma.done.wait (%p1803_p12), %s225_s23, 192  }
  0x28   : > { %1671 = vsyncadd (%p1803_p12), %s225_s23, 4294967104  ;;  %v1701_v0 = vmov 15.0   ;;  %v270_v3 = vld [vmem:[#allocation2] sm:$0xf]  ;;  %v271_v4 = vld [vmem:[%s228_s6] sm:$0xf]  ;;  %v290_v15 = vlaneseq }
  0x29   : > { %1520 = vrcp.f32 %v1701_v0  ;;  %s1425_s8 = sshll.u32 %s1846_s22, 3  ;;  %v272_v7 = vadd.f32 %v271_v4, %v270_v3  ;;  %v1702_v35 = vmov 0   ;;  %s1437_s11 = sshll.u32 %s1690_s15, 3 }
  0x2a   : > { %s238_s9 = scalar_lea.vmem [#allocation7], %s1425_s8  ;;  %v1856_v18 = vshrl.u32 %v290_v15, 7  ;;  %s1288_s28 = scalar_lea.hbm %s2916_s3, %s1437_s11 }
  0x2b   : > { %v1180_v12 = vld [vmem:[%s238_s9] sm:$0xff]  ;;  %s266_s29 = scalar_lea.vmem [#allocation8], %s1425_s8  ;;  %s1292_s4 = sshll.u32 %s1288_s28, 4  ;;  %s1293_s4 = int_to_ptr.hbm [resolvable:$true] %s1292_s4 }
  0x2c   : > { %1182 = vst [vmem:[#allocation1] ss:$2 sm:$0xff] %v1180_v12  ;;  %v1859_v22 = vadd.s32 120, %v1856_v18  ;;  %v1862_v23 = vadd.s32 248, %v1856_v18  ;;  %v1865_v24 = vadd.s32 112, %v1856_v18  ;;  %v1868_v25 = vadd.s32 240, %v1856_v18 }
  0x2d   : > { %v1871_v26 = vadd.s32 104, %v1856_v18  ;;  %v1874_v28 = vadd.s32 232, %v1856_v18  ;;  %v1883_v37 = vadd.s32 96, %v1856_v18  ;;  %v1886_v38 = vadd.s32 224, %v1856_v18  ;;  %s1290_s30 = sshll.u32 %s266_s29, 4  ;;  %s1275_s15 = scalar_lea.sflag [#allocation4], %s1846_s22  ;;  %s1291_s30 = int_to_ptr.vmem [resolvable:$true] %s1290_s30 }
  0x2e   : > { %s1626_s5 = sshra.s32 %s1293_s4, 4  ;;  %s1632_s26 = scalar_lea.hbm %s2916_s3, 16  ;;  %s1627_s5 = int_to_ptr.hbm [resolvable:$true] %s1626_s5 }
  0x2f   : > { %v1521_v1 = vpop.eup %1520  ;;  %s1628_s10 = scalar_lea.hbm %s1627_s5, 8  ;;  %p1633_p10 = scmp.lt.s32.totalorder %s1627_s5, %s2916_s3 }
  0x30   : > { %v274_v2 = vmul.f32 15.0, %v1521_v1  ;;  %vm278_vm0 = vweird.f32 %v1521_v1  ;;  %p1629_p7 = scmp.ne.s32.totalorder %s1627_s5, %s1628_s10  ;;  %p1634_p11 = scmp.lt.s32.totalorder %s1632_s26, %s1628_s10 }
  0x32   : > { %v275_v5 = vsub.f32 1.0, %v274_v2  ;;  %p1630_p8 = pnand %p1629_p7, %p1811_p0  ;;  %p1635_p12 = por %p1634_p11, %p1633_p10 }
  0x34   : > { %v276_v6 = vmul.f32 %v1521_v1, %v275_v5  ;;  %p1631_p9 = pneg %p1630_p8 }
  0x36   : > { %v277_v8 = vadd.f32 %v1521_v1, %v276_v6  ;;  %p1636_p13 = pnand %p1635_p12, %p1631_p9 }
  0x38   : > { %v279_v9 = vsel %vm278_vm0, %v1521_v1, %v277_v8 }
  0x39   : > { %v280_v10 = vmul.f32 %v279_v9, %v272_v7 }
  0x3b   : > { %v1427_v11 = vadd.f32 -0.5, %v280_v10 }
  0x3d   : > { %v282_v13 = vmul.f32 2.0, %v1427_v11 }
  0x3f   : > { %v283_v14 = vadd.f32 1.0, %v282_v13 }
  0x41   : > { %v284_v16 = vmul.f32 0.5, %v283_v14 }
  0x43   : > { %v285_v17 = vmul.f32 15.0, %v284_v16 }
  0x45   : > { %v286_v19 = vfloor.f32 %v285_v17 }
  0x47   : > { %v1439_v20 = vcvt.f32.s32 %v286_v19  ;;  %v288_v21 = vsub.f32 %v285_v17, %v286_v19 }
  0x49   : > { %v289_v27 = vsub.f32 1.0, %v288_v21  ;;  %vm323_vm1 = vcmp.ge.s32.totalorder %v1439_v20, 0  ;;  %vm324_vm2 = vcmp.lt.s32.totalorder %v1439_v20, 16  ;;  %v326_v30 = vmul.u32 16, %v1439_v20 }
  0x4a   : > { %vm1876_vm3 = vmand %vm323_vm1, %vm324_vm2  ;;  %v337_v31 = vrot.slane %v1439_v20, 7  ;;  %v544_v32 = vadd.s32 1, %v1439_v20  ;;  %v546_v33 = vrot.slane %v288_v21, 7 }
  0x4b   : > { %v328_v34 = vrot.slane %v289_v27, 7  ;;  %v332_v36 = vsel %vm1876_vm3, 1, %v1702_v35 }
  0x4c   : > { %v1428_v39 = vrot.slane %v332_v36, 9  ;;  %v338_v40 = vrot.slane %v337_v31, 2  ;;  %v547_v41 = vrot.slane %v546_v33, 2  ;;  %vm550_vm4 = vcmp.ge.s32.totalorder %v544_v32, 0 }
  0x4d   : > { %v329_v42 = vrot.slane %v328_v34, 2  ;;  %vm551_vm5 = vcmp.lt.s32.totalorder %v544_v32, 16  ;;  %v558_v43 = vrot.slane %v544_v32, 7  ;;  %v765_v44 = vmul.u32 16, %v544_v32 }
  0x4e   : > { %vm1888_vm6 = vcmp.ne.s32.totalorder %v1428_v39, 0  ;;  %v339_v46 = vadd.s32 %v338_v40, %v326_v30  ;;  %v549_v47 = vmul.f32 %v547_v41, %v289_v27  ;;  %vm1892_vm7 = vmand %vm550_vm4, %vm551_vm5  ;;  %v973_v49 = vmul.f32 %v547_v41, %v288_v21 }
  0x4f   : > { %v331_v50 = vmul.f32 %v329_v42, %v289_v27  ;;  %vm336_vm8 = vmand %vm1876_vm3, %vm1888_vm6  ;;  %v553_v51 = vsel %vm1892_vm7, 1, %v1702_v35  ;;  %v559_v52 = vrot.slane %v558_v43, 2  ;;  %v766_v53 = vmul.f32 %v329_v42, %v288_v21 }
  0x50   : > { %v341_v54 = vperm.slane %v339_v46, 0  ;;  %v342_v55 = vperm.slane %v339_v46, 2  ;;  %v1429_v56 = vrot.slane %v553_v51, 9  ;;  %vm767_vm9 = vmand %vm1892_vm7, %vm1888_vm6  ;;  %v768_v57 = vadd.s32 %v765_v44, %v338_v40 }
  0x51   : > { %v340_v58 = vsel %vm336_vm8, %v331_v50, 0.0  ;;  %v560_v59 = vadd.s32 %v559_v52, %v326_v30  ;;  %v769_v60 = vsel %vm767_vm9, %v766_v53, 0.0  ;;  %v975_v61 = vadd.s32 %v765_v44, %v559_v52 }
  0x52   : > { %v1906_v62 = vperm.slane %v341_v54, 0  ;;  %v1908_v63 = vperm.slane %v342_v55, 0  ;;  %v410_v0 = vperm.slane %v340_v58, 0  ;;  %v411_v1 = vperm.slane %v340_v58, 2 }
  0x53   : > { %vm1910_vm10 = vcmp.ne.s32.totalorder %v1429_v56, 0  ;;  %v562_v3 = vperm.slane %v560_v59, 0  ;;  %v563_v4 = vperm.slane %v560_v59, 2  ;;  %v770_v5 = vperm.slane %v768_v57, 0 }
  0x54   : > { %v1914_v6 = vperm.slane %v410_v0, 0  ;;  %v1916_v7 = vperm.slane %v411_v1, 0  ;;  %vm557_vm11 = vmand %vm1876_vm3, %vm1910_vm10  ;;  %v771_v8 = vperm.slane %v768_v57, 2  ;;  %v839_v9 = vperm.slane %v769_v60, 0 }
  0x55   : > { %v561_v10 = vsel %vm557_vm11, %v549_v47, 0.0  ;;  %v1922_v11 = vperm.slane %v562_v3, 0  ;;  %v1924_v12 = vperm.slane %v563_v4, 0  ;;  %v1926_v13 = vperm.slane %v770_v5, 0  ;;  %vm974_vm12 = vmand %vm1892_vm7, %vm1910_vm10 }
  0x56   : > { %v631_v14 = vperm.slane %v561_v10, 0  ;;  %v632_v15 = vperm.slane %v561_v10, 2  ;;  %v1932_v16 = vperm.slane %v771_v8, 0  ;;  %v840_v17 = vperm.slane %v769_v60, 2 }
  0x57   : > { %v1934_v19 = vperm.slane %v839_v9, 0  ;;  %v976_v20 = vsel %vm974_vm12, %v973_v49, 0.0  ;;  %v977_v21 = vperm.slane %v975_v61, 0  ;;  %v978_v27 = vperm.slane %v975_v61, 2 }
  0x58   : > { %v1936_v29 = vperm.slane %v631_v14, 0  ;;  %v1938_v30 = vperm.slane %v632_v15, 0  ;;  %v1940_v31 = vperm.slane %v840_v17, 0  ;;  %v1046_v32 = vperm.slane %v976_v20, 0 }
  0x59   : > { %v1942_v33 = vperm.slane %v977_v21, 0  ;;  %v1944_v34 = vperm.slane %v978_v27, 0  ;;  %v1047_v35 = vperm.slane %v976_v20, 2  ;;  %vm376_vm13 = vcmp.eq.s32.totalorder %v1859_v22, %v1908_v63 }
  0x5a   : > { %v1948_v36 = vperm.slane %v1046_v32, 0  ;;  %v447_v39 = vsel %vm376_vm13, %v1916_v7, 0.0  ;;  %vm597_vm14 = vcmp.eq.s32.totalorder %v1859_v22, %v1924_v12  ;;  %vm805_vm15 = vcmp.eq.s32.totalorder %v1859_v22, %v1932_v16 }
  0x5b   : > { %v1955_v40 = vperm.slane %v1047_v35, 0  ;;  %v668_v41 = vsel %vm597_vm14, %v1938_v30, 0.0  ;;  %v876_v42 = vsel %vm805_vm15, %v1940_v31, 0.0  ;;  %vm1012_vm0 = vcmp.eq.s32.totalorder %v1859_v22, %v1944_v34 }
  0x5c   : > { %v732_v43 = vadd.f32 %v668_v41, %v447_v39  ;;  %vm408_vm1 = vcmp.eq.s32.totalorder %v1862_v23, %v1908_v63  ;;  %vm629_vm2 = vcmp.eq.s32.totalorder %v1862_v23, %v1924_v12  ;;  %vm837_vm3 = vcmp.eq.s32.totalorder %v1862_v23, %v1932_v16 }
  0x5d   : > { %v1083_v44 = vsel %vm1012_vm0, %v1955_v40, 0.0  ;;  %v479_v45 = vsel %vm408_vm1, %v1916_v7, 0.0  ;;  %v700_v46 = vsel %vm629_vm2, %v1938_v30, 0.0  ;;  %v908_v47 = vsel %vm837_vm3, %v1940_v31, 0.0 }
  0x5e   : > { %v940_v48 = vadd.f32 %v876_v42, %v732_v43  ;;  %v764_v49 = vadd.f32 %v700_v46, %v479_v45  ;;  %vm1044_vm4 = vcmp.eq.s32.totalorder %v1862_v23, %v1944_v34  ;;  %vm374_vm5 = vcmp.eq.s32.totalorder %v1865_v24, %v1908_v63 }
  0x5f   : > { %v1115_v50 = vsel %vm1044_vm4, %v1955_v40, 0.0  ;;  %v445_v51 = vsel %vm374_vm5, %v1916_v7, 0.0  ;;  %vm595_vm6 = vcmp.eq.s32.totalorder %v1865_v24, %v1924_v12  ;;  %vm803_vm7 = vcmp.eq.s32.totalorder %v1865_v24, %v1932_v16 }
  0x60   : > { %v1147_v52 = vadd.f32 %v1083_v44, %v940_v48  ;;  %v972_v53 = vadd.f32 %v908_v47, %v764_v49  ;;  %v666_v54 = vsel %vm595_vm6, %v1938_v30, 0.0  ;;  %v874_v55 = vsel %vm803_vm7, %v1940_v31, 0.0 }
  0x61   : > { %v730_v56 = vadd.f32 %v666_v54, %v445_v51  ;;  %vm1010_vm8 = vcmp.eq.s32.totalorder %v1865_v24, %v1944_v34  ;;  %vm406_vm9 = vcmp.eq.s32.totalorder %v1868_v25, %v1908_v63  ;;  %vm627_vm10 = vcmp.eq.s32.totalorder %v1868_v25, %v1924_v12 }
  0x62   : > { %1227 = vmatpush.msra.mxu2 %v1147_v52  ;;  %v1179_v57 = vadd.f32 %v1115_v50, %v972_v53  ;;  %v1081_v58 = vsel %vm1010_vm8, %v1955_v40, 0.0  ;;  %v477_v59 = vsel %vm406_vm9, %v1916_v7, 0.0  ;;  %v698_v60 = vsel %vm627_vm10, %v1938_v30, 0.0 }
  0x63   : > { %v938_v61 = vadd.f32 %v874_v55, %v730_v56  ;;  %v762_v0 = vadd.f32 %v698_v60, %v477_v59  ;;  %vm835_vm11 = vcmp.eq.s32.totalorder %v1868_v25, %v1932_v16  ;;  %vm1042_vm12 = vcmp.eq.s32.totalorder %v1868_v25, %v1944_v34 }
  0x64   : > { %1247 = vmatpush.msra.mxu3 %v1179_v57  ;;  %v906_v1 = vsel %vm835_vm11, %v1940_v31, 0.0  ;;  %v1113_v2 = vsel %vm1042_vm12, %v1955_v40, 0.0  ;;  %vm372_vm13 = vcmp.eq.s32.totalorder %v1871_v26, %v1908_v63  ;;  %vm593_vm14 = vcmp.eq.s32.totalorder %v1871_v26, %v1924_v12 }
  0x65   : > { %v1145_v3 = vadd.f32 %v1081_v58, %v938_v61  ;;  %v970_v4 = vadd.f32 %v906_v1, %v762_v0  ;;  %v443_v5 = vsel %vm372_vm13, %v1916_v7, 0.0  ;;  %v664_v8 = vsel %vm593_vm14, %v1938_v30, 0.0 }
  0x66   : > { %v728_v9 = vadd.f32 %v664_v8, %v443_v5  ;;  %vm801_vm15 = vcmp.eq.s32.totalorder %v1871_v26, %v1932_v16  ;;  %vm1008_vm0 = vcmp.eq.s32.totalorder %v1871_v26, %v1944_v34  ;;  %vm404_vm1 = vcmp.eq.s32.totalorder %v1874_v28, %v1908_v63 }
  0x67   : > { %1228 = vmatpush.msra.mxu2 %v1145_v3  ;;  %v1177_v10 = vadd.f32 %v1113_v2, %v970_v4  ;;  %v872_v14 = vsel %vm801_vm15, %v1940_v31, 0.0  ;;  %v1079_v15 = vsel %vm1008_vm0, %v1955_v40, 0.0  ;;  %v475_v17 = vsel %vm404_vm1, %v1916_v7, 0.0 }
  0x68   : > { %v936_v20 = vadd.f32 %v872_v14, %v728_v9  ;;  %vm625_vm2 = vcmp.eq.s32.totalorder %v1874_v28, %v1924_v12  ;;  %vm833_vm3 = vcmp.eq.s32.totalorder %v1874_v28, %v1932_v16  ;;  %vm1040_vm4 = vcmp.eq.s32.totalorder %v1874_v28, %v1944_v34 }
  0x69   : > { %1248 = vmatpush.msra.mxu3 %v1177_v10  ;;  %v696_v21 = vsel %vm625_vm2, %v1938_v30, 0.0  ;;  %v904_v27 = vsel %vm833_vm3, %v1940_v31, 0.0  ;;  %v1111_v32 = vsel %vm1040_vm4, %v1955_v40, 0.0  ;;  %vm370_vm5 = vcmp.eq.s32.totalorder %v1883_v37, %v1908_v63 }
  0x6a   : > { %v1143_v35 = vadd.f32 %v1079_v15, %v936_v20  ;;  %v760_v39 = vadd.f32 %v696_v21, %v475_v17  ;;  %v441_v41 = vsel %vm370_vm5, %v1916_v7, 0.0  ;;  %vm591_vm6 = vcmp.eq.s32.totalorder %v1883_v37, %v1924_v12 }
  0x6b   : > { %v662_v42 = vsel %vm591_vm6, %v1938_v30, 0.0  ;;  %vm799_vm7 = vcmp.eq.s32.totalorder %v1883_v37, %v1932_v16  ;;  %vm1006_vm8 = vcmp.eq.s32.totalorder %v1883_v37, %v1944_v34  ;;  %vm402_vm9 = vcmp.eq.s32.totalorder %v1886_v38, %v1908_v63 }
  0x6c   : > { %1229 = vmatpush.msra.mxu2 %v1143_v35  ;;  %v968_v43 = vadd.f32 %v904_v27, %v760_v39  ;;  %v726_v44 = vadd.f32 %v662_v42, %v441_v41  ;;  %v870_v45 = vsel %vm799_vm7, %v1940_v31, 0.0  ;;  %v1077_v46 = vsel %vm1006_vm8, %v1955_v40, 0.0 }
  0x6d   : > { %v473_v47 = vsel %vm402_vm9, %v1916_v7, 0.0  ;;  %vm623_vm10 = vcmp.eq.s32.totalorder %v1886_v38, %v1924_v12  ;;  %vm831_vm11 = vcmp.eq.s32.totalorder %v1886_v38, %v1932_v16  ;;  %vm1038_vm12 = vcmp.eq.s32.totalorder %v1886_v38, %v1944_v34 }
  0x6e   : > { %v1175_v48 = vadd.f32 %v1111_v32, %v968_v43  ;;  %v934_v49 = vadd.f32 %v870_v45, %v726_v44  ;;  %v694_v50 = vsel %vm623_vm10, %v1938_v30, 0.0  ;;  %v902_v51 = vsel %vm831_vm11, %v1940_v31, 0.0 }
  0x6f   : > { %v758_v52 = vadd.f32 %v694_v50, %v473_v47  ;;  %v1109_v53 = vsel %vm1038_vm12, %v1955_v40, 0.0  ;;  %vm375_vm13 = vcmp.eq.s32.totalorder %v1859_v22, %v1906_v62  ;;  %vm596_vm14 = vcmp.eq.s32.totalorder %v1859_v22, %v1922_v11 }
  0x70   : > { %1249 = vmatpush.msra.mxu3 %v1175_v48  ;;  %v1141_v54 = vadd.f32 %v1077_v46, %v934_v49  ;;  %v446_v55 = vsel %vm375_vm13, %v1914_v6, 0.0  ;;  %v667_v56 = vsel %vm596_vm14, %v1936_v29, 0.0  ;;  %vm804_vm15 = vcmp.eq.s32.totalorder %v1859_v22, %v1926_v13 }
  0x71   : > { %v966_v57 = vadd.f32 %v902_v51, %v758_v52  ;;  %v731_v58 = vadd.f32 %v667_v56, %v446_v55  ;;  %v875_v59 = vsel %vm804_vm15, %v1934_v19, 0.0  ;;  %vm1011_vm0 = vcmp.eq.s32.totalorder %v1859_v22, %v1942_v33 }
  0x72   : > { %1230 = vmatpush.msra.mxu2 %v1141_v54  ;;  %v1082_v60 = vsel %vm1011_vm0, %v1948_v36, 0.0  ;;  %vm407_vm1 = vcmp.eq.s32.totalorder %v1862_v23, %v1906_v62  ;;  %vm628_vm2 = vcmp.eq.s32.totalorder %v1862_v23, %v1922_v11  ;;  %vm836_vm3 = vcmp.eq.s32.totalorder %v1862_v23, %v1926_v13 }
  0x73   : > { %v1173_v61 = vadd.f32 %v1109_v53, %v966_v57  ;;  %v939_v0 = vadd.f32 %v875_v59, %v731_v58  ;;  %v478_v1 = vsel %vm407_vm1, %v1914_v6, 0.0  ;;  %v699_v2 = vsel %vm628_vm2, %v1936_v29, 0.0 }
  0x74   : > { %v763_v3 = vadd.f32 %v699_v2, %v478_v1  ;;  %v907_v22 = vsel %vm836_vm3, %v1934_v19, 0.0  ;;  %vm1043_vm4 = vcmp.eq.s32.totalorder %v1862_v23, %v1942_v33  ;;  %v2070_v4 = vadd.s32 88, %v1856_v18 }
  0x75   : > { %1250 = vmatpush.msra.mxu3 %v1173_v61  ;;  %v1146_v5 = vadd.f32 %v1082_v60, %v939_v0  ;;  %v1114_v8 = vsel %vm1043_vm4, %v1948_v36, 0.0  ;;  %v2074_v9 = vadd.s32 216, %v1856_v18  ;;  %vm373_vm5 = vcmp.eq.s32.totalorder %v1865_v24, %v1906_v62 }
  0x76   : > { %v971_v10 = vadd.f32 %v907_v22, %v763_v3  ;;  %vm368_vm6 = vcmp.eq.s32.totalorder %v2070_v4, %v1908_v63  ;;  %vm589_vm7 = vcmp.eq.s32.totalorder %v2070_v4, %v1924_v12  ;;  %vm797_vm8 = vcmp.eq.s32.totalorder %v2070_v4, %v1932_v16 }
  0x77   : > { %1187 = vmatpush.msra.mxu0 %v1146_v5  ;;  %v439_v23 = vsel %vm368_vm6, %v1916_v7, 0.0  ;;  %v660_v14 = vsel %vm589_vm7, %v1938_v30, 0.0  ;;  %v868_v15 = vsel %vm797_vm8, %v1940_v31, 0.0  ;;  %vm1004_vm9 = vcmp.eq.s32.totalorder %v2070_v4, %v1944_v34 }
  0x78   : > { %v1178_v17 = vadd.f32 %v1114_v8, %v971_v10  ;;  %v724_v20 = vadd.f32 %v660_v14, %v439_v23  ;;  %v1075_v21 = vsel %vm1004_vm9, %v1955_v40, 0.0  ;;  %vm400_vm10 = vcmp.eq.s32.totalorder %v2074_v9, %v1908_v63 }
  0x79   : > { %v471_v27 = vsel %vm400_vm10, %v1916_v7, 0.0  ;;  %vm621_vm11 = vcmp.eq.s32.totalorder %v2074_v9, %v1924_v12  ;;  %vm829_vm12 = vcmp.eq.s32.totalorder %v2074_v9, %v1932_v16  ;;  %vm1036_vm13 = vcmp.eq.s32.totalorder %v2074_v9, %v1944_v34 }
  0x7a   : > { %1207 = vmatpush.msra.mxu1 %v1178_v17  ;;  %v932_v32 = vadd.f32 %v868_v15, %v724_v20  ;;  %v692_v35 = vsel %vm621_vm11, %v1938_v30, 0.0  ;;  %v900_v39 = vsel %vm829_vm12, %v1940_v31, 0.0  ;;  %v1107_v41 = vsel %vm1036_vm13, %v1955_v40, 0.0 }
  0x7b   : > { %v756_v42 = vadd.f32 %v692_v35, %v471_v27  ;;  %v444_v43 = vsel %vm373_vm5, %v1914_v6, 0.0  ;;  %vm594_vm14 = vcmp.eq.s32.totalorder %v1865_v24, %v1922_v11  ;;  %vm802_vm15 = vcmp.eq.s32.totalorder %v1865_v24, %v1926_v13 }
  0x7c   : > { %v1139_v44 = vadd.f32 %v1075_v21, %v932_v32  ;;  %v665_v45 = vsel %vm594_vm14, %v1936_v29, 0.0  ;;  %v873_v46 = vsel %vm802_vm15, %v1934_v19, 0.0  ;;  %vm1009_vm0 = vcmp.eq.s32.totalorder %v1865_v24, %v1942_v33 }
  0x7d   : > { %v964_v47 = vadd.f32 %v900_v39, %v756_v42  ;;  %v729_v48 = vadd.f32 %v665_v45, %v444_v43  ;;  %v1080_v49 = vsel %vm1009_vm0, %v1948_v36, 0.0  ;;  %vm405_vm1 = vcmp.eq.s32.totalorder %v1868_v25, %v1906_v62 }
  0x7e   : > { %1231 = vmatpush.msra.mxu2 %v1139_v44  ;;  %v476_v50 = vsel %vm405_vm1, %v1914_v6, 0.0  ;;  %vm626_vm2 = vcmp.eq.s32.totalorder %v1868_v25, %v1922_v11  ;;  %vm834_vm3 = vcmp.eq.s32.totalorder %v1868_v25, %v1926_v13  ;;  %vm1041_vm4 = vcmp.eq.s32.totalorder %v1868_v25, %v1942_v33 }
  0x7f   : > { %v1171_v24 = vadd.f32 %v1107_v41, %v964_v47  ;;  %v937_v51 = vadd.f32 %v873_v46, %v729_v48  ;;  %v697_v52 = vsel %vm626_vm2, %v1936_v29, 0.0  ;;  %v905_v53 = vsel %vm834_vm3, %v1934_v19, 0.0 }
  0x80   : > { %v761_v54 = vadd.f32 %v697_v52, %v476_v50  ;;  %v1112_v55 = vsel %vm1041_vm4, %v1948_v36, 0.0  ;;  %v2128_v56 = vadd.s32 80, %v1856_v18  ;;  %v2131_v57 = vadd.s32 208, %v1856_v18 }
  0x81   : > { %1251 = vmatpush.msra.mxu3 %v1171_v24  ;;  %v1144_v58 = vadd.f32 %v1080_v49, %v937_v51  ;;  %vm371_vm5 = vcmp.eq.s32.totalorder %v1871_v26, %v1906_v62  ;;  %vm592_vm6 = vcmp.eq.s32.totalorder %v1871_v26, %v1922_v11  ;;  %vm800_vm7 = vcmp.eq.s32.totalorder %v1871_v26, %v1926_v13 }
  0x82   : > { %v969_v25 = vadd.f32 %v905_v53, %v761_v54  ;;  %vm366_vm8 = vcmp.eq.s32.totalorder %v2128_v56, %v1908_v63  ;;  %vm587_vm9 = vcmp.eq.s32.totalorder %v2128_v56, %v1924_v12  ;;  %vm795_vm10 = vcmp.eq.s32.totalorder %v2128_v56, %v1932_v16 }
  0x83   : > { %1188 = vmatpush.msra.mxu0 %v1144_v58  ;;  %v437_v59 = vsel %vm366_vm8, %v1916_v7, 0.0  ;;  %v658_v60 = vsel %vm587_vm9, %v1938_v30, 0.0  ;;  %v866_v61 = vsel %vm795_vm10, %v1940_v31, 0.0  ;;  %vm1002_vm11 = vcmp.eq.s32.totalorder %v2128_v56, %v1944_v34 }
  0x84   : > { %v1176_v0 = vadd.f32 %v1112_v55, %v969_v25  ;;  %v722_v1 = vadd.f32 %v658_v60, %v437_v59  ;;  %v1073_v2 = vsel %vm1002_vm11, %v1955_v40, 0.0  ;;  %vm398_vm12 = vcmp.eq.s32.totalorder %v2131_v57, %v1908_v63 }
  0x85   : > { %v469_v3 = vsel %vm398_vm12, %v1916_v7, 0.0  ;;  %vm619_vm13 = vcmp.eq.s32.totalorder %v2131_v57, %v1924_v12  ;;  %vm827_vm14 = vcmp.eq.s32.totalorder %v2131_v57, %v1932_v16  ;;  %vm1034_vm15 = vcmp.eq.s32.totalorder %v2131_v57, %v1944_v34 }
  0x86   : > { %1208 = vmatpush.msra.mxu1 %v1176_v0  ;;  %v930_v22 = vadd.f32 %v866_v61, %v722_v1  ;;  %v690_v5 = vsel %vm619_vm13, %v1938_v30, 0.0  ;;  %v898_v8 = vsel %vm827_vm14, %v1940_v31, 0.0  ;;  %v1105_v10 = vsel %vm1034_vm15, %v1955_v40, 0.0 }
  0x87   : > { %v754_v23 = vadd.f32 %v690_v5, %v469_v3  ;;  %v442_v14 = vsel %vm371_vm5, %v1914_v6, 0.0  ;;  %v663_v15 = vsel %vm592_vm6, %v1936_v29, 0.0  ;;  %v871_v17 = vsel %vm800_vm7, %v1934_v19, 0.0 }
  0x88   : > { %v1137_v20 = vadd.f32 %v1073_v2, %v930_v22  ;;  %v727_v21 = vadd.f32 %v663_v15, %v442_v14  ;;  %vm1007_vm0 = vcmp.eq.s32.totalorder %v1871_v26, %v1942_v33  ;;  %vm403_vm1 = vcmp.eq.s32.totalorder %v1874_v28, %v1906_v62 }
  0x89   : > { %v962_v27 = vadd.f32 %v898_v8, %v754_v23  ;;  %v1078_v32 = vsel %vm1007_vm0, %v1948_v36, 0.0  ;;  %v474_v35 = vsel %vm403_vm1, %v1914_v6, 0.0  ;;  %vm624_vm2 = vcmp.eq.s32.totalorder %v1874_v28, %v1922_v11 }
  0x8a   : > { %1232 = vmatpush.msra.mxu2 %v1137_v20  ;;  %v935_v39 = vadd.f32 %v871_v17, %v727_v21  ;;  %v695_v41 = vsel %vm624_vm2, %v1936_v29, 0.0  ;;  %vm832_vm3 = vcmp.eq.s32.totalorder %v1874_v28, %v1926_v13  ;;  %vm1039_vm4 = vcmp.eq.s32.totalorder %v1874_v28, %v1942_v33 }
  0x8b   : > { %v1169_v26 = vadd.f32 %v1105_v10, %v962_v27  ;;  %v759_v42 = vadd.f32 %v695_v41, %v474_v35  ;;  %v903_v43 = vsel %vm832_vm3, %v1934_v19, 0.0  ;;  %v1110_v44 = vsel %vm1039_vm4, %v1948_v36, 0.0 }
  0x8c   : > { %v1142_v45 = vadd.f32 %v1078_v32, %v935_v39  ;;  %v2191_v46 = vadd.s32 72, %v1856_v18  ;;  %v2194_v47 = vadd.s32 200, %v1856_v18  ;;  %vm369_vm5 = vcmp.eq.s32.totalorder %v1883_v37, %v1906_v62 }
  0x8d   : > { %1252 = vmatpush.msra.mxu3 %v1169_v26  ;;  %v967_v48 = vadd.f32 %v903_v43, %v759_v42  ;;  %v440_v28 = vsel %vm369_vm5, %v1914_v6, 0.0  ;;  %vm590_vm6 = vcmp.eq.s32.totalorder %v1883_v37, %v1922_v11  ;;  %vm798_vm7 = vcmp.eq.s32.totalorder %v1883_v37, %v1926_v13 }
  0x8e   : > { %1189 = vmatpush.msra.mxu0 %v1142_v45  ;;  %vm364_vm8 = vcmp.eq.s32.totalorder %v2191_v46, %v1908_v63  ;;  %vm585_vm9 = vcmp.eq.s32.totalorder %v2191_v46, %v1924_v12  ;;  %vm793_vm10 = vcmp.eq.s32.totalorder %v2191_v46, %v1932_v16  ;;  %vm1000_vm11 = vcmp.eq.s32.totalorder %v2191_v46, %v1944_v34 }
  0x8f   : > { %v1174_v49 = vadd.f32 %v1110_v44, %v967_v48  ;;  %v435_v50 = vsel %vm364_vm8, %v1916_v7, 0.0  ;;  %v656_v24 = vsel %vm585_vm9, %v1938_v30, 0.0  ;;  %v864_v51 = vsel %vm793_vm10, %v1940_v31, 0.0 }
  0x90   : > { %v720_v52 = vadd.f32 %v656_v24, %v435_v50  ;;  %v1071_v53 = vsel %vm1000_vm11, %v1955_v40, 0.0  ;;  %vm396_vm12 = vcmp.eq.s32.totalorder %v2194_v47, %v1908_v63  ;;  %vm617_vm13 = vcmp.eq.s32.totalorder %v2194_v47, %v1924_v12 }
  0x91   : > { %1209 = vmatpush.msra.mxu1 %v1174_v49  ;;  %v467_v54 = vsel %vm396_vm12, %v1916_v7, 0.0  ;;  %v688_v55 = vsel %vm617_vm13, %v1938_v30, 0.0  ;;  %vm825_vm14 = vcmp.eq.s32.totalorder %v2194_v47, %v1932_v16  ;;  %vm1032_vm15 = vcmp.eq.s32.totalorder %v2194_v47, %v1944_v34 }
  0x92   : > { %v928_v58 = vadd.f32 %v864_v51, %v720_v52  ;;  %v752_v25 = vadd.f32 %v688_v55, %v467_v54  ;;  %v896_v59 = vsel %vm825_vm14, %v1940_v31, 0.0  ;;  %v1103_v60 = vsel %vm1032_vm15, %v1955_v40, 0.0 }
  0x93   : > { %v661_v61 = vsel %vm590_vm6, %v1936_v29, 0.0  ;;  %v869_v0 = vsel %vm798_vm7, %v1934_v19, 0.0  ;;  %vm1005_vm0 = vcmp.eq.s32.totalorder %v1883_v37, %v1942_v33  ;;  %vm401_vm1 = vcmp.eq.s32.totalorder %v1886_v38, %v1906_v62 }
  0x94   : > { %v1135_v1 = vadd.f32 %v1071_v53, %v928_v58  ;;  %v960_v2 = vadd.f32 %v896_v59, %v752_v25  ;;  %v725_v3 = vadd.f32 %v661_v61, %v440_v28  ;;  %v1076_v22 = vsel %vm1005_vm0, %v1948_v36, 0.0 }
  0x95   : > { %v472_v5 = vsel %vm401_vm1, %v1914_v6, 0.0  ;;  %vm622_vm2 = vcmp.eq.s32.totalorder %v1886_v38, %v1922_v11  ;;  %vm830_vm3 = vcmp.eq.s32.totalorder %v1886_v38, %v1926_v13  ;;  %vm1037_vm4 = vcmp.eq.s32.totalorder %v1886_v38, %v1942_v33 }
  0x96   : > { %1233 = vmatpush.msra.mxu2 %v1135_v1  ;;  %v1167_v37 = vadd.f32 %v1103_v60, %v960_v2  ;;  %v933_v8 = vadd.f32 %v869_v0, %v725_v3  ;;  %v693_v10 = vsel %vm622_vm2, %v1936_v29, 0.0  ;;  %v901_v23 = vsel %vm830_vm3, %v1934_v19, 0.0 }
  0x97   : > { %v757_v14 = vadd.f32 %v693_v10, %v472_v5  ;;  %v1108_v15 = vsel %vm1037_vm4, %v1948_v36, 0.0  ;;  %v2251_v17 = vadd.s32 64, %v1856_v18  ;;  %v2254_v20 = vadd.s32 192, %v1856_v18 }
  0x98   : > { %1253 = vmatpush.msra.mxu3 %v1167_v37  ;;  %v1140_v21 = vadd.f32 %v1076_v22, %v933_v8  ;;  %vm367_vm5 = vcmp.eq.s32.totalorder %v2070_v4, %v1906_v62  ;;  %vm588_vm6 = vcmp.eq.s32.totalorder %v2070_v4, %v1922_v11  ;;  %vm796_vm7 = vcmp.eq.s32.totalorder %v2070_v4, %v1926_v13 }
  0x99   : > { %v965_v38 = vadd.f32 %v901_v23, %v757_v14  ;;  %vm362_vm8 = vcmp.eq.s32.totalorder %v2251_v17, %v1908_v63  ;;  %vm583_vm9 = vcmp.eq.s32.totalorder %v2251_v17, %v1924_v12  ;;  %vm791_vm10 = vcmp.eq.s32.totalorder %v2251_v17, %v1932_v16 }
  0x9a   : > { %1190 = vmatpush.msra.mxu0 %v1140_v21  ;;  %v433_v27 = vsel %vm362_vm8, %v1916_v7, 0.0  ;;  %v654_v32 = vsel %vm583_vm9, %v1938_v30, 0.0  ;;  %v862_v35 = vsel %vm791_vm10, %v1940_v31, 0.0  ;;  %vm998_vm11 = vcmp.eq.s32.totalorder %v2251_v17, %v1944_v34 }
  0x9b   : > { %v1172_v39 = vadd.f32 %v1108_v15, %v965_v38  ;;  %v718_v41 = vadd.f32 %v654_v32, %v433_v27  ;;  %v1069_v26 = vsel %vm998_vm11, %v1955_v40, 0.0  ;;  %vm394_vm12 = vcmp.eq.s32.totalorder %v2254_v20, %v1908_v63 }
  0x9c   : > { %v465_v42 = vsel %vm394_vm12, %v1916_v7, 0.0  ;;  %vm615_vm13 = vcmp.eq.s32.totalorder %v2254_v20, %v1924_v12  ;;  %vm823_vm14 = vcmp.eq.s32.totalorder %v2254_v20, %v1932_v16  ;;  %vm1030_vm15 = vcmp.eq.s32.totalorder %v2254_v20, %v1944_v34 }
  0x9d   : > { %1210 = vmatpush.msra.mxu1 %v1172_v39  ;;  %v926_v43 = vadd.f32 %v862_v35, %v718_v41  ;;  %v686_v44 = vsel %vm615_vm13, %v1938_v30, 0.0  ;;  %v894_v45 = vsel %vm823_vm14, %v1940_v31, 0.0  ;;  %v1101_v48 = vsel %vm1030_vm15, %v1955_v40, 0.0 }
  0x9e   : > { %v750_v28 = vadd.f32 %v686_v44, %v465_v42  ;;  %v438_v49 = vsel %vm367_vm5, %v1914_v6, 0.0  ;;  %v659_v50 = vsel %vm588_vm6, %v1936_v29, 0.0  ;;  %v867_v24 = vsel %vm796_vm7, %v1934_v19, 0.0 }
  0x9f   : > { %v1133_v51 = vadd.f32 %v1069_v26, %v926_v43  ;;  %v723_v52 = vadd.f32 %v659_v50, %v438_v49  ;;  %vm1003_vm0 = vcmp.eq.s32.totalorder %v2070_v4, %v1942_v33  ;;  %vm399_vm1 = vcmp.eq.s32.totalorder %v2074_v9, %v1906_v62 }
  0xa0   : > { %v958_v53 = vadd.f32 %v894_v45, %v750_v28  ;;  %v1074_v54 = vsel %vm1003_vm0, %v1948_v36, 0.0  ;;  %v470_v55 = vsel %vm399_vm1, %v1914_v6, 0.0  ;;  %vm620_vm2 = vcmp.eq.s32.totalorder %v2074_v9, %v1922_v11 }
  0xa1   : > { %1234 = vmatpush.msra.mxu2 %v1133_v51  ;;  %v931_v58 = vadd.f32 %v867_v24, %v723_v52  ;;  %v691_v25 = vsel %vm620_vm2, %v1936_v29, 0.0  ;;  %vm828_vm3 = vcmp.eq.s32.totalorder %v2074_v9, %v1926_v13  ;;  %vm1035_vm4 = vcmp.eq.s32.totalorder %v2074_v9, %v1942_v33 }
  0xa2   : > { %v1165_v4 = vadd.f32 %v1101_v48, %v958_v53  ;;  %v755_v59 = vadd.f32 %v691_v25, %v470_v55  ;;  %v899_v60 = vsel %vm828_vm3, %v1934_v19, 0.0  ;;  %v1106_v61 = vsel %vm1035_vm4, %v1948_v36, 0.0 }
  0xa3   : > { %v1138_v0 = vadd.f32 %v1074_v54, %v931_v58  ;;  %v2314_v1 = vadd.s32 56, %v1856_v18  ;;  %v2317_v2 = vadd.s32 184, %v1856_v18  ;;  %vm365_vm5 = vcmp.eq.s32.totalorder %v2128_v56, %v1906_v62 }
  0xa4   : > { %1254 = vmatpush.msra.mxu3 %v1165_v4  ;;  %v963_v3 = vadd.f32 %v899_v60, %v755_v59  ;;  %v436_v9 = vsel %vm365_vm5, %v1914_v6, 0.0  ;;  %vm586_vm6 = vcmp.eq.s32.totalorder %v2128_v56, %v1922_v11  ;;  %vm794_vm7 = vcmp.eq.s32.totalorder %v2128_v56, %v1926_v13 }
  0xa5   : > { %1191 = vmatpush.msra.mxu0 %v1138_v0  ;;  %vm360_vm8 = vcmp.eq.s32.totalorder %v2314_v1, %v1908_v63  ;;  %vm581_vm9 = vcmp.eq.s32.totalorder %v2314_v1, %v1924_v12  ;;  %vm789_vm10 = vcmp.eq.s32.totalorder %v2314_v1, %v1932_v16  ;;  %vm996_vm11 = vcmp.eq.s32.totalorder %v2314_v1, %v1944_v34 }
  0xa6   : > { %v1170_v22 = vadd.f32 %v1106_v61, %v963_v3  ;;  %v431_v5 = vsel %vm360_vm8, %v1916_v7, 0.0  ;;  %v652_v37 = vsel %vm581_vm9, %v1938_v30, 0.0  ;;  %v860_v8 = vsel %vm789_vm10, %v1940_v31, 0.0 }
  0xa7   : > { %v716_v10 = vadd.f32 %v652_v37, %v431_v5  ;;  %v1067_v23 = vsel %vm996_vm11, %v1955_v40, 0.0  ;;  %vm392_vm12 = vcmp.eq.s32.totalorder %v2317_v2, %v1908_v63  ;;  %vm613_vm13 = vcmp.eq.s32.totalorder %v2317_v2, %v1924_v12 }
  0xa8   : > { %1211 = vmatpush.msra.mxu1 %v1170_v22  ;;  %v463_v14 = vsel %vm392_vm12, %v1916_v7, 0.0  ;;  %v684_v15 = vsel %vm613_vm13, %v1938_v30, 0.0  ;;  %vm821_vm14 = vcmp.eq.s32.totalorder %v2317_v2, %v1932_v16  ;;  %vm1028_vm15 = vcmp.eq.s32.totalorder %v2317_v2, %v1944_v34 }
  0xa9   : > { %v924_v21 = vadd.f32 %v860_v8, %v716_v10  ;;  %v748_v38 = vadd.f32 %v684_v15, %v463_v14  ;;  %v892_v27 = vsel %vm821_vm14, %v1940_v31, 0.0  ;;  %v1099_v32 = vsel %vm1028_vm15, %v1955_v40, 0.0 }
  0xaa   : > { %v657_v35 = vsel %vm586_vm6, %v1936_v29, 0.0  ;;  %v865_v39 = vsel %vm794_vm7, %v1934_v19, 0.0  ;;  %vm1001_vm0 = vcmp.eq.s32.totalorder %v2128_v56, %v1942_v33  ;;  %vm397_vm1 = vcmp.eq.s32.totalorder %v2131_v57, %v1906_v62 }
  0xab   : > { %v1131_v41 = vadd.f32 %v1067_v23, %v924_v21  ;;  %v956_v26 = vadd.f32 %v892_v27, %v748_v38  ;;  %v721_v42 = vadd.f32 %v657_v35, %v436_v9  ;;  %v1072_v43 = vsel %vm1001_vm0, %v1948_v36, 0.0 }
  0xac   : > { %v468_v44 = vsel %vm397_vm1, %v1914_v6, 0.0  ;;  %vm618_vm2 = vcmp.eq.s32.totalorder %v2131_v57, %v1922_v11  ;;  %vm826_vm3 = vcmp.eq.s32.totalorder %v2131_v57, %v1926_v13  ;;  %vm1033_vm4 = vcmp.eq.s32.totalorder %v2131_v57, %v1942_v33 }
  0xad   : > { %1235 = vmatpush.msra.mxu2 %v1131_v41  ;;  %v1163_v56 = vadd.f32 %v1099_v32, %v956_v26  ;;  %v929_v45 = vadd.f32 %v865_v39, %v721_v42  ;;  %v689_v48 = vsel %vm618_vm2, %v1936_v29, 0.0  ;;  %v897_v28 = vsel %vm826_vm3, %v1934_v19, 0.0 }
  0xae   : > { %v753_v49 = vadd.f32 %v689_v48, %v468_v44  ;;  %v1104_v50 = vsel %vm1033_vm4, %v1948_v36, 0.0  ;;  %v2374_v24 = vadd.s32 48, %v1856_v18  ;;  %v2377_v51 = vadd.s32 176, %v1856_v18 }
  0xaf   : > { %1255 = vmatpush.msra.mxu3 %v1163_v56  ;;  %v1136_v52 = vadd.f32 %v1072_v43, %v929_v45  ;;  %vm363_vm5 = vcmp.eq.s32.totalorder %v2191_v46, %v1906_v62  ;;  %vm584_vm6 = vcmp.eq.s32.totalorder %v2191_v46, %v1922_v11  ;;  %vm792_vm7 = vcmp.eq.s32.totalorder %v2191_v46, %v1926_v13 }
  0xb0   : > { %v961_v57 = vadd.f32 %v897_v28, %v753_v49  ;;  %vm358_vm8 = vcmp.eq.s32.totalorder %v2374_v24, %v1908_v63  ;;  %vm579_vm9 = vcmp.eq.s32.totalorder %v2374_v24, %v1924_v12  ;;  %vm787_vm10 = vcmp.eq.s32.totalorder %v2374_v24, %v1932_v16 }
  0xb1   : > { %1192 = vmatpush.msra.mxu0 %v1136_v52  ;;  %v429_v53 = vsel %vm358_vm8, %v1916_v7, 0.0  ;;  %v650_v54 = vsel %vm579_vm9, %v1938_v30, 0.0  ;;  %v858_v55 = vsel %vm787_vm10, %v1940_v31, 0.0  ;;  %vm994_vm11 = vcmp.eq.s32.totalorder %v2374_v24, %v1944_v34 }
  0xb2   : > { %v1168_v58 = vadd.f32 %v1104_v50, %v961_v57  ;;  %v714_v25 = vadd.f32 %v650_v54, %v429_v53  ;;  %v1065_v4 = vsel %vm994_vm11, %v1955_v40, 0.0  ;;  %vm390_vm12 = vcmp.eq.s32.totalorder %v2377_v51, %v1908_v63 }
  0xb3   : > { %v461_v59 = vsel %vm390_vm12, %v1916_v7, 0.0  ;;  %vm611_vm13 = vcmp.eq.s32.totalorder %v2377_v51, %v1924_v12  ;;  %vm819_vm14 = vcmp.eq.s32.totalorder %v2377_v51, %v1932_v16  ;;  %vm1026_vm15 = vcmp.eq.s32.totalorder %v2377_v51, %v1944_v34 }
  0xb4   : > { %1212 = vmatpush.msra.mxu1 %v1168_v58  ;;  %v922_v60 = vadd.f32 %v858_v55, %v714_v25  ;;  %v682_v61 = vsel %vm611_vm13, %v1938_v30, 0.0  ;;  %v890_v0 = vsel %vm819_vm14, %v1940_v31, 0.0  ;;  %v1097_v3 = vsel %vm1026_vm15, %v1955_v40, 0.0 }
  0xb5   : > { %v746_v9 = vadd.f32 %v682_v61, %v461_v59  ;;  %v434_v22 = vsel %vm363_vm5, %v1914_v6, 0.0  ;;  %v655_v5 = vsel %vm584_vm6, %v1936_v29, 0.0  ;;  %v863_v37 = vsel %vm792_vm7, %v1934_v19, 0.0 }
  0xb6   : > { %v1129_v8 = vadd.f32 %v1065_v4, %v922_v60  ;;  %v719_v10 = vadd.f32 %v655_v5, %v434_v22  ;;  %vm999_vm0 = vcmp.eq.s32.totalorder %v2191_v46, %v1942_v33  ;;  %vm395_vm1 = vcmp.eq.s32.totalorder %v2194_v47, %v1906_v62 }
  0xb7   : > { %v954_v23 = vadd.f32 %v890_v0, %v746_v9  ;;  %v1070_v14 = vsel %vm999_vm0, %v1948_v36, 0.0  ;;  %v466_v15 = vsel %vm395_vm1, %v1914_v6, 0.0  ;;  %vm616_vm2 = vcmp.eq.s32.totalorder %v2194_v47, %v1922_v11 }
  0xb8   : > { %1236 = vmatpush.msra.mxu2 %v1129_v8  ;;  %v927_v21 = vadd.f32 %v863_v37, %v719_v10  ;;  %v687_v38 = vsel %vm616_vm2, %v1936_v29, 0.0  ;;  %vm824_vm3 = vcmp.eq.s32.totalorder %v2194_v47, %v1926_v13  ;;  %vm1031_vm4 = vcmp.eq.s32.totalorder %v2194_v47, %v1942_v33 }
  0xb9   : > { %v1161_v46 = vadd.f32 %v1097_v3, %v954_v23  ;;  %v751_v27 = vadd.f32 %v687_v38, %v466_v15  ;;  %v895_v32 = vsel %vm824_vm3, %v1934_v19, 0.0  ;;  %v1102_v35 = vsel %vm1031_vm4, %v1948_v36, 0.0 }
  0xba   : > { %v1134_v39 = vadd.f32 %v1070_v14, %v927_v21  ;;  %v2437_v41 = vadd.s32 40, %v1856_v18  ;;  %v2440_v26 = vadd.s32 168, %v1856_v18  ;;  %vm361_vm5 = vcmp.eq.s32.totalorder %v2251_v17, %v1906_v62 }
  0xbb   : > { %1256 = vmatpush.msra.mxu3 %v1161_v46  ;;  %v959_v42 = vadd.f32 %v895_v32, %v751_v27  ;;  %v432_v47 = vsel %vm361_vm5, %v1914_v6, 0.0  ;;  %vm582_vm6 = vcmp.eq.s32.totalorder %v2251_v17, %v1922_v11  ;;  %vm790_vm7 = vcmp.eq.s32.totalorder %v2251_v17, %v1926_v13 }
  0xbc   : > { %1193 = vmatpush.msra.mxu0 %v1134_v39  ;;  %vm356_vm8 = vcmp.eq.s32.totalorder %v2437_v41, %v1908_v63  ;;  %vm577_vm9 = vcmp.eq.s32.totalorder %v2437_v41, %v1924_v12  ;;  %vm785_vm10 = vcmp.eq.s32.totalorder %v2437_v41, %v1932_v16  ;;  %vm992_vm11 = vcmp.eq.s32.totalorder %v2437_v41, %v1944_v34 }
  0xbd   : > { %v1166_v43 = vadd.f32 %v1102_v35, %v959_v42  ;;  %v427_v44 = vsel %vm356_vm8, %v1916_v7, 0.0  ;;  %v648_v56 = vsel %vm577_vm9, %v1938_v30, 0.0  ;;  %v856_v45 = vsel %vm785_vm10, %v1940_v31, 0.0 }
  0xbe   : > { %v712_v48 = vadd.f32 %v648_v56, %v427_v44  ;;  %v1063_v28 = vsel %vm992_vm11, %v1955_v40, 0.0  ;;  %vm388_vm12 = vcmp.eq.s32.totalorder %v2440_v26, %v1908_v63  ;;  %vm609_vm13 = vcmp.eq.s32.totalorder %v2440_v26, %v1924_v12 }
  0xbf   : > { %1213 = vmatpush.msra.mxu1 %v1166_v43  ;;  %v459_v49 = vsel %vm388_vm12, %v1916_v7, 0.0  ;;  %v680_v50 = vsel %vm609_vm13, %v1938_v30, 0.0  ;;  %vm817_vm14 = vcmp.eq.s32.totalorder %v2440_v26, %v1932_v16  ;;  %vm1024_vm15 = vcmp.eq.s32.totalorder %v2440_v26, %v1944_v34 }
  0xc0   : > { %v920_v52 = vadd.f32 %v856_v45, %v712_v48  ;;  %v744_v57 = vadd.f32 %v680_v50, %v459_v49  ;;  %v888_v53 = vsel %vm817_vm14, %v1940_v31, 0.0  ;;  %v1095_v54 = vsel %vm1024_vm15, %v1955_v40, 0.0 }
  0xc1   : > { %v653_v55 = vsel %vm582_vm6, %v1936_v29, 0.0  ;;  %v861_v58 = vsel %vm790_vm7, %v1934_v19, 0.0  ;;  %vm997_vm0 = vcmp.eq.s32.totalorder %v2251_v17, %v1942_v33  ;;  %vm393_vm1 = vcmp.eq.s32.totalorder %v2254_v20, %v1906_v62 }
  0xc2   : > { %v1127_v25 = vadd.f32 %v1063_v28, %v920_v52  ;;  %v952_v4 = vadd.f32 %v888_v53, %v744_v57  ;;  %v717_v59 = vadd.f32 %v653_v55, %v432_v47  ;;  %v1068_v60 = vsel %vm997_vm0, %v1948_v36, 0.0 }
  0xc3   : > { %v464_v61 = vsel %vm393_vm1, %v1914_v6, 0.0  ;;  %vm614_vm2 = vcmp.eq.s32.totalorder %v2254_v20, %v1922_v11  ;;  %vm822_vm3 = vcmp.eq.s32.totalorder %v2254_v20, %v1926_v13  ;;  %vm1029_vm4 = vcmp.eq.s32.totalorder %v2254_v20, %v1942_v33 }
  0xc4   : > { %1237 = vmatpush.msra.mxu2 %v1127_v25  ;;  %v1159_v17 = vadd.f32 %v1095_v54, %v952_v4  ;;  %v925_v0 = vadd.f32 %v861_v58, %v717_v59  ;;  %v685_v3 = vsel %vm614_vm2, %v1936_v29, 0.0  ;;  %v893_v9 = vsel %vm822_vm3, %v1934_v19, 0.0 }
  0xc5   : > { %v749_v22 = vadd.f32 %v685_v3, %v464_v61  ;;  %v1100_v5 = vsel %vm1029_vm4, %v1948_v36, 0.0  ;;  %v2497_v37 = vadd.s32 32, %v1856_v18  ;;  %v2500_v8 = vadd.s32 160, %v1856_v18 }
  0xc6   : > { %1257 = vmatpush.msra.mxu3 %v1159_v17  ;;  %v1132_v10 = vadd.f32 %v1068_v60, %v925_v0  ;;  %vm359_vm5 = vcmp.eq.s32.totalorder %v2314_v1, %v1906_v62  ;;  %vm580_vm6 = vcmp.eq.s32.totalorder %v2314_v1, %v1922_v11  ;;  %vm788_vm7 = vcmp.eq.s32.totalorder %v2314_v1, %v1926_v13 }
  0xc7   : > { %v957_v20 = vadd.f32 %v893_v9, %v749_v22  ;;  %vm354_vm8 = vcmp.eq.s32.totalorder %v2497_v37, %v1908_v63  ;;  %vm575_vm9 = vcmp.eq.s32.totalorder %v2497_v37, %v1924_v12  ;;  %vm783_vm10 = vcmp.eq.s32.totalorder %v2497_v37, %v1932_v16 }
  0xc8   : > { %1194 = vmatpush.msra.mxu0 %v1132_v10  ;;  %v425_v23 = vsel %vm354_vm8, %v1916_v7, 0.0  ;;  %v646_v14 = vsel %vm575_vm9, %v1938_v30, 0.0  ;;  %v854_v15 = vsel %vm783_vm10, %v1940_v31, 0.0  ;;  %vm990_vm11 = vcmp.eq.s32.totalorder %v2497_v37, %v1944_v34 }
  0xc9   : > { %v1164_v21 = vadd.f32 %v1100_v5, %v957_v20  ;;  %v710_v38 = vadd.f32 %v646_v14, %v425_v23  ;;  %v1061_v46 = vsel %vm990_vm11, %v1955_v40, 0.0  ;;  %vm386_vm12 = vcmp.eq.s32.totalorder %v2500_v8, %v1908_v63 }
  0xca   : > { %v457_v27 = vsel %vm386_vm12, %v1916_v7, 0.0  ;;  %vm607_vm13 = vcmp.eq.s32.totalorder %v2500_v8, %v1924_v12  ;;  %vm815_vm14 = vcmp.eq.s32.totalorder %v2500_v8, %v1932_v16  ;;  %vm1022_vm15 = vcmp.eq.s32.totalorder %v2500_v8, %v1944_v34 }
  0xcb   : > { %1214 = vmatpush.msra.mxu1 %v1164_v21  ;;  %v918_v32 = vadd.f32 %v854_v15, %v710_v38  ;;  %v678_v35 = vsel %vm607_vm13, %v1938_v30, 0.0  ;;  %v886_v39 = vsel %vm815_vm14, %v1940_v31, 0.0  ;;  %v1093_v42 = vsel %vm1022_vm15, %v1955_v40, 0.0 }
  0xcc   : > { %v742_v47 = vadd.f32 %v678_v35, %v457_v27  ;;  %v430_v43 = vsel %vm359_vm5, %v1914_v6, 0.0  ;;  %v651_v44 = vsel %vm580_vm6, %v1936_v29, 0.0  ;;  %v859_v56 = vsel %vm788_vm7, %v1934_v19, 0.0 }
  0xcd   : > { %v1125_v45 = vadd.f32 %v1061_v46, %v918_v32  ;;  %v715_v48 = vadd.f32 %v651_v44, %v430_v43  ;;  %vm995_vm0 = vcmp.eq.s32.totalorder %v2314_v1, %v1942_v33  ;;  %vm391_vm1 = vcmp.eq.s32.totalorder %v2317_v2, %v1906_v62 }
  0xce   : > { %v950_v28 = vadd.f32 %v886_v39, %v742_v47  ;;  %v1066_v49 = vsel %vm995_vm0, %v1948_v36, 0.0  ;;  %v462_v50 = vsel %vm391_vm1, %v1914_v6, 0.0  ;;  %vm612_vm2 = vcmp.eq.s32.totalorder %v2317_v2, %v1922_v11 }
  0xcf   : > { %1238 = vmatpush.msra.mxu2 %v1125_v45  ;;  %v923_v52 = vadd.f32 %v859_v56, %v715_v48  ;;  %v683_v57 = vsel %vm612_vm2, %v1936_v29, 0.0  ;;  %vm820_vm3 = vcmp.eq.s32.totalorder %v2317_v2, %v1926_v13  ;;  %vm1027_vm4 = vcmp.eq.s32.totalorder %v2317_v2, %v1942_v33 }
  0xd0   : > { %v1157_v1 = vadd.f32 %v1093_v42, %v950_v28  ;;  %v747_v53 = vadd.f32 %v683_v57, %v462_v50  ;;  %v891_v54 = vsel %vm820_vm3, %v1934_v19, 0.0  ;;  %v1098_v55 = vsel %vm1027_vm4, %v1948_v36, 0.0 }
  0xd1   : > { %v1130_v58 = vadd.f32 %v1066_v49, %v923_v52  ;;  %v2560_v25 = vadd.s32 24, %v1856_v18  ;;  %v2563_v4 = vadd.s32 152, %v1856_v18  ;;  %vm357_vm5 = vcmp.eq.s32.totalorder %v2374_v24, %v1906_v62 }
  0xd2   : > { %1258 = vmatpush.msra.mxu3 %v1157_v1  ;;  %v955_v59 = vadd.f32 %v891_v54, %v747_v53  ;;  %v428_v2 = vsel %vm357_vm5, %v1914_v6, 0.0  ;;  %vm578_vm6 = vcmp.eq.s32.totalorder %v2374_v24, %v1922_v11  ;;  %vm786_vm7 = vcmp.eq.s32.totalorder %v2374_v24, %v1926_v13 }
  0xd3   : > { %1195 = vmatpush.msra.mxu0 %v1130_v58  ;;  %vm352_vm8 = vcmp.eq.s32.totalorder %v2560_v25, %v1908_v63  ;;  %vm573_vm9 = vcmp.eq.s32.totalorder %v2560_v25, %v1924_v12  ;;  %vm781_vm10 = vcmp.eq.s32.totalorder %v2560_v25, %v1932_v16  ;;  %vm988_vm11 = vcmp.eq.s32.totalorder %v2560_v25, %v1944_v34 }
  0xd4   : > { %v1162_v60 = vadd.f32 %v1098_v55, %v955_v59  ;;  %v423_v61 = vsel %vm352_vm8, %v1916_v7, 0.0  ;;  %v644_v17 = vsel %vm573_vm9, %v1938_v30, 0.0  ;;  %v852_v0 = vsel %vm781_vm10, %v1940_v31, 0.0 }
  0xd5   : > { %v708_v3 = vadd.f32 %v644_v17, %v423_v61  ;;  %v1059_v9 = vsel %vm988_vm11, %v1955_v40, 0.0  ;;  %vm384_vm12 = vcmp.eq.s32.totalorder %v2563_v4, %v1908_v63  ;;  %vm605_vm13 = vcmp.eq.s32.totalorder %v2563_v4, %v1924_v12 }
  0xd6   : > { %1215 = vmatpush.msra.mxu1 %v1162_v60  ;;  %v455_v22 = vsel %vm384_vm12, %v1916_v7, 0.0  ;;  %v676_v5 = vsel %vm605_vm13, %v1938_v30, 0.0  ;;  %vm813_vm14 = vcmp.eq.s32.totalorder %v2563_v4, %v1932_v16  ;;  %vm1020_vm15 = vcmp.eq.s32.totalorder %v2563_v4, %v1944_v34 }
  0xd7   : > { %v916_v10 = vadd.f32 %v852_v0, %v708_v3  ;;  %v740_v20 = vadd.f32 %v676_v5, %v455_v22  ;;  %v884_v23 = vsel %vm813_vm14, %v1940_v31, 0.0  ;;  %v1091_v14 = vsel %vm1020_vm15, %v1955_v40, 0.0 }
  0xd8   : > { %v649_v15 = vsel %vm578_vm6, %v1936_v29, 0.0  ;;  %v857_v21 = vsel %vm786_vm7, %v1934_v19, 0.0  ;;  %vm993_vm0 = vcmp.eq.s32.totalorder %v2374_v24, %v1942_v33  ;;  %vm389_vm1 = vcmp.eq.s32.totalorder %v2377_v51, %v1906_v62 }
  0xd9   : > { %v1123_v38 = vadd.f32 %v1059_v9, %v916_v10  ;;  %v948_v46 = vadd.f32 %v884_v23, %v740_v20  ;;  %v713_v27 = vadd.f32 %v649_v15, %v428_v2  ;;  %v1064_v32 = vsel %vm993_vm0, %v1948_v36, 0.0 }
  0xda   : > { %v460_v35 = vsel %vm389_vm1, %v1914_v6, 0.0  ;;  %vm610_vm2 = vcmp.eq.s32.totalorder %v2377_v51, %v1922_v11  ;;  %vm818_vm3 = vcmp.eq.s32.totalorder %v2377_v51, %v1926_v13  ;;  %vm1025_vm4 = vcmp.eq.s32.totalorder %v2377_v51, %v1942_v33 }
  0xdb   : > { %1239 = vmatpush.msra.mxu2 %v1123_v38  ;;  %v1155_v24 = vadd.f32 %v1091_v14, %v948_v46  ;;  %v921_v39 = vadd.f32 %v857_v21, %v713_v27  ;;  %v681_v42 = vsel %vm610_vm2, %v1936_v29, 0.0  ;;  %v889_v47 = vsel %vm818_vm3, %v1934_v19, 0.0 }
  0xdc   : > { %v745_v43 = vadd.f32 %v681_v42, %v460_v35  ;;  %v1096_v44 = vsel %vm1025_vm4, %v1948_v36, 0.0  ;;  %v2620_v56 = vadd.s32 16, %v1856_v18  ;;  %v2623_v45 = vadd.s32 144, %v1856_v18 }
  0xdd   : > { %1259 = vmatpush.msra.mxu3 %v1155_v24  ;;  %v1128_v48 = vadd.f32 %v1064_v32, %v921_v39  ;;  %vm355_vm5 = vcmp.eq.s32.totalorder %v2437_v41, %v1906_v62  ;;  %vm576_vm6 = vcmp.eq.s32.totalorder %v2437_v41, %v1922_v11  ;;  %vm784_vm7 = vcmp.eq.s32.totalorder %v2437_v41, %v1926_v13 }
  0xde   : > { %v953_v51 = vadd.f32 %v889_v47, %v745_v43  ;;  %vm350_vm8 = vcmp.eq.s32.totalorder %v2620_v56, %v1908_v63  ;;  %vm571_vm9 = vcmp.eq.s32.totalorder %v2620_v56, %v1924_v12  ;;  %vm779_vm10 = vcmp.eq.s32.totalorder %v2620_v56, %v1932_v16 }
  0xdf   : > { %1196 = vmatpush.msra.mxu0 %v1128_v48  ;;  %v421_v28 = vsel %vm350_vm8, %v1916_v7, 0.0  ;;  %v642_v49 = vsel %vm571_vm9, %v1938_v30, 0.0  ;;  %v850_v50 = vsel %vm779_vm10, %v1940_v31, 0.0  ;;  %vm986_vm11 = vcmp.eq.s32.totalorder %v2620_v56, %v1944_v34 }
  0xe0   : > { %v1160_v52 = vadd.f32 %v1096_v44, %v953_v51  ;;  %v706_v57 = vadd.f32 %v642_v49, %v421_v28  ;;  %v1057_v1 = vsel %vm986_vm11, %v1955_v40, 0.0  ;;  %vm382_vm12 = vcmp.eq.s32.totalorder %v2623_v45, %v1908_v63 }
  0xe1   : > { %v453_v53 = vsel %vm382_vm12, %v1916_v7, 0.0  ;;  %vm603_vm13 = vcmp.eq.s32.totalorder %v2623_v45, %v1924_v12  ;;  %vm811_vm14 = vcmp.eq.s32.totalorder %v2623_v45, %v1932_v16  ;;  %vm1018_vm15 = vcmp.eq.s32.totalorder %v2623_v45, %v1944_v34 }
  0xe2   : > { %1216 = vmatpush.msra.mxu1 %v1160_v52  ;;  %v914_v54 = vadd.f32 %v850_v50, %v706_v57  ;;  %v674_v55 = vsel %vm603_vm13, %v1938_v30, 0.0  ;;  %v882_v58 = vsel %vm811_vm14, %v1940_v31, 0.0  ;;  %v1089_v59 = vsel %vm1018_vm15, %v1955_v40, 0.0 }
  0xe3   : > { %v738_v2 = vadd.f32 %v674_v55, %v453_v53  ;;  %v426_v60 = vsel %vm355_vm5, %v1914_v6, 0.0  ;;  %v647_v61 = vsel %vm576_vm6, %v1936_v29, 0.0  ;;  %v855_v17 = vsel %vm784_vm7, %v1934_v19, 0.0 }
  0xe4   : > { %v1121_v0 = vadd.f32 %v1057_v1, %v914_v54  ;;  %v711_v3 = vadd.f32 %v647_v61, %v426_v60  ;;  %vm991_vm0 = vcmp.eq.s32.totalorder %v2437_v41, %v1942_v33  ;;  %vm387_vm1 = vcmp.eq.s32.totalorder %v2440_v26, %v1906_v62 }
  0xe5   : > { %v946_v9 = vadd.f32 %v882_v58, %v738_v2  ;;  %v1062_v22 = vsel %vm991_vm0, %v1948_v36, 0.0  ;;  %v458_v5 = vsel %vm387_vm1, %v1914_v6, 0.0  ;;  %vm608_vm2 = vcmp.eq.s32.totalorder %v2440_v26, %v1922_v11 }
  0xe6   : > { %1240 = vmatpush.msra.mxu2 %v1121_v0  ;;  %v919_v10 = vadd.f32 %v855_v17, %v711_v3  ;;  %v679_v20 = vsel %vm608_vm2, %v1936_v29, 0.0  ;;  %vm816_vm3 = vcmp.eq.s32.totalorder %v2440_v26, %v1926_v13  ;;  %vm1023_vm4 = vcmp.eq.s32.totalorder %v2440_v26, %v1942_v33 }
  0xe7   : > { %v1153_v41 = vadd.f32 %v1089_v59, %v946_v9  ;;  %v743_v23 = vadd.f32 %v679_v20, %v458_v5  ;;  %v887_v14 = vsel %vm816_vm3, %v1934_v19, 0.0  ;;  %v1094_v15 = vsel %vm1023_vm4, %v1948_v36, 0.0 }
  0xe8   : > { %v1126_v21 = vadd.f32 %v1062_v22, %v919_v10  ;;  %v2683_v38 = vadd.s32 8, %v1856_v18  ;;  %v2686_v46 = vadd.s32 136, %v1856_v18  ;;  %vm353_vm5 = vcmp.eq.s32.totalorder %v2497_v37, %v1906_v62 }
  0xe9   : > { %1260 = vmatpush.msra.mxu3 %v1153_v41  ;;  %v951_v27 = vadd.f32 %v887_v14, %v743_v23  ;;  %v424_v26 = vsel %vm353_vm5, %v1914_v6, 0.0  ;;  %vm574_vm6 = vcmp.eq.s32.totalorder %v2497_v37, %v1922_v11  ;;  %vm782_vm7 = vcmp.eq.s32.totalorder %v2497_v37, %v1926_v13 }
  0xea   : > { %1197 = vmatpush.msra.mxu0 %v1126_v21  ;;  %vm348_vm8 = vcmp.eq.s32.totalorder %v2683_v38, %v1908_v63  ;;  %vm569_vm9 = vcmp.eq.s32.totalorder %v2683_v38, %v1924_v12  ;;  %vm777_vm10 = vcmp.eq.s32.totalorder %v2683_v38, %v1932_v16  ;;  %vm984_vm11 = vcmp.eq.s32.totalorder %v2683_v38, %v1944_v34 }
  0xeb   : > { %v1158_v32 = vadd.f32 %v1094_v15, %v951_v27  ;;  %v419_v35 = vsel %vm348_vm8, %v1916_v7, 0.0  ;;  %v640_v24 = vsel %vm569_vm9, %v1938_v30, 0.0  ;;  %v848_v39 = vsel %vm777_vm10, %v1940_v31, 0.0 }
  0xec   : > { %v704_v42 = vadd.f32 %v640_v24, %v419_v35  ;;  %v1055_v47 = vsel %vm984_vm11, %v1955_v40, 0.0  ;;  %vm380_vm12 = vcmp.eq.s32.totalorder %v2686_v46, %v1908_v63  ;;  %vm601_vm13 = vcmp.eq.s32.totalorder %v2686_v46, %v1924_v12  ;;  %v2796_v24 = vld.sshfl [vmem:[#allocation1 + $0x8] sm:$0xff pattern:$0x75316420] }
  0xed   : > { %1217 = vmatpush.msra.mxu1 %v1158_v32  ;;  %v451_v43 = vsel %vm380_vm12, %v1916_v7, 0.0  ;;  %v672_v44 = vsel %vm601_vm13, %v1938_v30, 0.0  ;;  %vm809_vm14 = vcmp.eq.s32.totalorder %v2686_v46, %v1932_v16  ;;  %vm1016_vm15 = vcmp.eq.s32.totalorder %v2686_v46, %v1944_v34  ;;  %v2774_v32 = vld.sshfl [vmem:[#allocation1] sm:$0xff pattern:$0x75316420] }
  0xee   : > { %v912_v48 = vadd.f32 %v848_v39, %v704_v42  ;;  %v736_v51 = vadd.f32 %v672_v44, %v451_v43  ;;  %v880_v28 = vsel %vm809_vm14, %v1940_v31, 0.0  ;;  %v1087_v49 = vsel %vm1016_vm15, %v1955_v40, 0.0 }
  0xef   : > { %v645_v50 = vsel %vm574_vm6, %v1936_v29, 0.0  ;;  %v853_v52 = vsel %vm782_vm7, %v1934_v19, 0.0  ;;  %vm989_vm0 = vcmp.eq.s32.totalorder %v2497_v37, %v1942_v33  ;;  %vm385_vm1 = vcmp.eq.s32.totalorder %v2500_v8, %v1906_v62 }
  0xf0   : > { %v1119_v57 = vadd.f32 %v1055_v47, %v912_v48  ;;  %v944_v1 = vadd.f32 %v880_v28, %v736_v51  ;;  %v709_v53 = vadd.f32 %v645_v50, %v424_v26  ;;  %v1060_v54 = vsel %vm989_vm0, %v1948_v36, 0.0 }
  0xf1   : > { %v456_v55 = vsel %vm385_vm1, %v1914_v6, 0.0  ;;  %vm606_vm2 = vcmp.eq.s32.totalorder %v2500_v8, %v1922_v11  ;;  %vm814_vm3 = vcmp.eq.s32.totalorder %v2500_v8, %v1926_v13  ;;  %vm1021_vm4 = vcmp.eq.s32.totalorder %v2500_v8, %v1942_v33 }
  0xf2   : > { %1241 = vmatpush.msra.mxu2 %v1119_v57  ;;  %v1151_v37 = vadd.f32 %v1087_v49, %v944_v1  ;;  %v917_v58 = vadd.f32 %v853_v52, %v709_v53  ;;  %v677_v59 = vsel %vm606_vm2, %v1936_v29, 0.0  ;;  %v885_v2 = vsel %vm814_vm3, %v1934_v19, 0.0 }
  0xf3   : > { %v741_v60 = vadd.f32 %v677_v59, %v456_v55  ;;  %v1092_v61 = vsel %vm1021_vm4, %v1948_v36, 0.0  ;;  %vm346_vm5 = vcmp.eq.s32.totalorder %v1856_v18, %v1908_v63  ;;  %vm567_vm6 = vcmp.eq.s32.totalorder %v1856_v18, %v1924_v12 }
  0xf4   : > { %1261 = vmatpush.msra.mxu3 %v1151_v37  ;;  %v1124_v17 = vadd.f32 %v1060_v54, %v917_v58  ;;  %v417_v8 = vsel %vm346_vm5, %v1916_v7, 0.0  ;;  %v638_v0 = vsel %vm567_vm6, %v1938_v30, 0.0  ;;  %vm775_vm7 = vcmp.eq.s32.totalorder %v1856_v18, %v1932_v16 }
  0xf5   : > { %v949_v3 = vadd.f32 %v885_v2, %v741_v60  ;;  %v702_v9 = vadd.f32 %v638_v0, %v417_v8  ;;  %v846_v22 = vsel %vm775_vm7, %v1940_v31, 0.0  ;;  %vm982_vm8 = vcmp.eq.s32.totalorder %v1856_v18, %v1944_v34 }
  0xf6   : > { %1198 = vmatpush.msra.mxu0 %v1124_v17  ;;  %v1053_v5 = vsel %vm982_vm8, %v1955_v40, 0.0  ;;  %v2755_v10 = vadd.s32 128, %v1856_v18  ;;  %vm351_vm9 = vcmp.eq.s32.totalorder %v2560_v25, %v1906_v62  ;;  %vm572_vm10 = vcmp.eq.s32.totalorder %v2560_v25, %v1922_v11 }
  0xf7   : > { %v1156_v20 = vadd.f32 %v1092_v61, %v949_v3  ;;  %v910_v41 = vadd.f32 %v846_v22, %v702_v9  ;;  %v422_v23 = vsel %vm351_vm9, %v1914_v6, 0.0  ;;  %v643_v14 = vsel %vm572_vm10, %v1936_v29, 0.0 }
  0xf8   : > { %vm378_vm11 = vcmp.eq.s32.totalorder %v2755_v10, %v1908_v63  ;;  %vm599_vm12 = vcmp.eq.s32.totalorder %v2755_v10, %v1924_v12  ;;  %vm807_vm13 = vcmp.eq.s32.totalorder %v2755_v10, %v1932_v16  ;;  %vm1014_vm14 = vcmp.eq.s32.totalorder %v2755_v10, %v1944_v34 }
  0xf9   : > { %1218 = vmatpush.msra.mxu1 %v1156_v20  ;;  %v1117_v15 = vadd.f32 %v1053_v5, %v910_v41  ;;  %v449_v21 = vsel %vm378_vm11, %v1916_v7, 0.0  ;;  %v670_v27 = vsel %vm599_vm12, %v1938_v30, 0.0  ;;  %v878_v26 = vsel %vm807_vm13, %v1940_v31, 0.0 }
  0xfa   : > { %v734_v63 = vadd.f32 %v670_v27, %v449_v21  ;;  %v1085_v35 = vsel %vm1014_vm14, %v1955_v40, 0.0  ;;  %v707_v12 = vadd.f32 %v643_v14, %v422_v23  ;;  %vm780_vm15 = vcmp.eq.s32.totalorder %v2560_v25, %v1926_v13 }
  0xfb   : > { %1242 = vmatpush.msra.mxu2 %v1117_v15  ;;  %v851_v16 = vsel %vm780_vm15, %v1934_v19, 0.0  ;;  %vm987_vm0 = vcmp.eq.s32.totalorder %v2560_v25, %v1942_v33  ;;  %vm383_vm1 = vcmp.eq.s32.totalorder %v2563_v4, %v1906_v62  ;;  %vm604_vm2 = vcmp.eq.s32.totalorder %v2563_v4, %v1922_v11 }
  0xfc   : > { %v942_v7 = vadd.f32 %v878_v26, %v734_v63  ;;  %1243 = vmatmul.f32.vlgmr.msra.gmra.mxu2 %v2774_v32  ;;  %v915_v30 = vadd.f32 %v851_v16, %v707_v12  ;;  %v1058_v31 = vsel %vm987_vm0, %v1948_v36, 0.0  ;;  %v454_v34 = vsel %vm383_vm1, %v1914_v6, 0.0 }
  0xfd   : > { %v675_v40 = vsel %vm604_vm2, %v1936_v29, 0.0  ;;  %vm812_vm3 = vcmp.eq.s32.totalorder %v2563_v4, %v1926_v13  ;;  %vm1019_vm4 = vcmp.eq.s32.totalorder %v2563_v4, %v1942_v33  ;;  %vm349_vm5 = vcmp.eq.s32.totalorder %v2620_v56, %v1906_v62 }
  0xfe   : > { %v1149_v25 = vadd.f32 %v1085_v35, %v942_v7  ;;  %v1122_v39 = vadd.f32 %v1058_v31, %v915_v30  ;;  %v739_v42 = vadd.f32 %v675_v40, %v454_v34  ;;  %v883_v47 = vsel %vm812_vm3, %v1934_v19, 0.0 }
  0xff   : > { %v1090_v43 = vsel %vm1019_vm4, %v1948_v36, 0.0  ;;  %v420_v44 = vsel %vm349_vm5, %v1914_v6, 0.0  ;;  %vm570_vm6 = vcmp.eq.s32.totalorder %v2620_v56, %v1922_v11  ;;  %vm778_vm7 = vcmp.eq.s32.totalorder %v2620_v56, %v1926_v13 }
 0x100   : > { %1262 = vmatpush.msra.mxu3 %v1149_v25  ;;  %1199 = vmatpush.msra.mxu0 %v1122_v39  ;;  %v947_v4 = vadd.f32 %v883_v47, %v739_v42  ;;  %v641_v48 = vsel %vm570_vm6, %v1936_v29, 0.0  ;;  %v849_v51 = vsel %vm778_vm7, %v1934_v19, 0.0  ;;  %vm985_vm8 = vcmp.eq.s32.totalorder %v2620_v56, %v1942_v33 }
 0x101   : > { %1263 = vmatmul.f32.vlgmr.msra.gmra.mxu3 %v2796_v24  ;;  %v705_v28 = vadd.f32 %v641_v48, %v420_v44  ;;  %v1056_v49 = vsel %vm985_vm8, %v1948_v36, 0.0  ;;  %vm381_vm9 = vcmp.eq.s32.totalorder %v2623_v45, %v1906_v62  ;;  %vm602_vm10 = vcmp.eq.s32.totalorder %v2623_v45, %v1922_v11 }
 0x102   : > { %v1154_v50 = vadd.f32 %v1090_v43, %v947_v4  ;;  %v452_v52 = vsel %vm381_vm9, %v1914_v6, 0.0  ;;  %v673_v57 = vsel %vm602_vm10, %v1936_v29, 0.0  ;;  %vm810_vm11 = vcmp.eq.s32.totalorder %v2623_v45, %v1926_v13 }
 0x103   : > { %v913_v56 = vadd.f32 %v849_v51, %v705_v28  ;;  %v737_v1 = vadd.f32 %v673_v57, %v452_v52  ;;  %v881_v53 = vsel %vm810_vm11, %v1934_v19, 0.0  ;;  %vm1017_vm12 = vcmp.eq.s32.totalorder %v2623_v45, %v1942_v33 }
 0x104   : > { %1219 = vmatpush.msra.mxu1 %v1154_v50  ;;  %v1088_v54 = vsel %vm1017_vm12, %v1948_v36, 0.0  ;;  %vm347_vm13 = vcmp.eq.s32.totalorder %v2683_v38, %v1906_v62  ;;  %vm568_vm14 = vcmp.eq.s32.totalorder %v2683_v38, %v1922_v11  ;;  %vm776_vm15 = vcmp.eq.s32.totalorder %v2683_v38, %v1926_v13 }
 0x105   : > { %v1120_v55 = vadd.f32 %v1056_v49, %v913_v56  ;;  %v945_v37 = vadd.f32 %v881_v53, %v737_v1  ;;  %v418_v58 = vsel %vm347_vm13, %v1914_v6, 0.0  ;;  %v639_v59 = vsel %vm568_vm14, %v1936_v29, 0.0 }
 0x106   : > { %v703_v2 = vadd.f32 %v639_v59, %v418_v58  ;;  %v847_v45 = vsel %vm776_vm15, %v1934_v19, 0.0  ;;  %vm983_vm0 = vcmp.eq.s32.totalorder %v2683_v38, %v1942_v33  ;;  %vm379_vm1 = vcmp.eq.s32.totalorder %v2686_v46, %v1906_v62 }
 0x107   : > { %1200 = vmatpush.msra.mxu0 %v1120_v55  ;;  %v1152_v60 = vadd.f32 %v1088_v54, %v945_v37  ;;  %v1054_v61 = vsel %vm983_vm0, %v1948_v36, 0.0  ;;  %v450_v17 = vsel %vm379_vm1, %v1914_v6, 0.0  ;;  %vm600_vm2 = vcmp.eq.s32.totalorder %v2686_v46, %v1922_v11 }
 0x108   : > { %v911_v8 = vadd.f32 %v847_v45, %v703_v2  ;;  %v671_v0 = vsel %vm600_vm2, %v1936_v29, 0.0  ;;  %vm808_vm3 = vcmp.eq.s32.totalorder %v2686_v46, %v1926_v13  ;;  %vm1015_vm4 = vcmp.eq.s32.totalorder %v2686_v46, %v1942_v33 }
 0x109   : > { %1220 = vmatpush.msra.mxu1 %v1152_v60  ;;  %v735_v38 = vadd.f32 %v671_v0, %v450_v17  ;;  %v879_v3 = vsel %vm808_vm3, %v1934_v19, 0.0  ;;  %v1086_v9 = vsel %vm1015_vm4, %v1948_v36, 0.0  ;;  %vm345_vm5 = vcmp.eq.s32.totalorder %v1856_v18, %v1906_v62 }
 0x10a   : > { %v1118_v22 = vadd.f32 %v1054_v61, %v911_v8  ;;  %v416_v5 = vsel %vm345_vm5, %v1914_v6, 0.0  ;;  %vm566_vm6 = vcmp.eq.s32.totalorder %v1856_v18, %v1922_v11  ;;  %vm774_vm7 = vcmp.eq.s32.totalorder %v1856_v18, %v1926_v13 }
 0x10b   : > { %v943_v20 = vadd.f32 %v879_v3, %v735_v38  ;;  %v637_v46 = vsel %vm566_vm6, %v1936_v29, 0.0  ;;  %v845_v41 = vsel %vm774_vm7, %v1934_v19, 0.0  ;;  %vm981_vm8 = vcmp.eq.s32.totalorder %v1856_v18, %v1942_v33 }
 0x10c   : > { %1201 = vmatpush.msra.mxu0 %v1118_v22  ;;  %v701_v23 = vadd.f32 %v637_v46, %v416_v5  ;;  %v1052_v14 = vsel %vm981_vm8, %v1948_v36, 0.0  ;;  %vm377_vm9 = vcmp.eq.s32.totalorder %v2755_v10, %v1906_v62  ;;  %vm598_vm10 = vcmp.eq.s32.totalorder %v2755_v10, %v1922_v11 }
 0x10d   : > { %v1150_v15 = vadd.f32 %v1086_v9, %v943_v20  ;;  %v448_v21 = vsel %vm377_vm9, %v1914_v6, 0.0  ;;  %v669_v27 = vsel %vm598_vm10, %v1936_v29, 0.0  ;;  %vm806_vm11 = vcmp.eq.s32.totalorder %v2755_v10, %v1926_v13 }
 0x10e   : > { %v909_v18 = vadd.f32 %v845_v41, %v701_v23  ;;  %v733_v26 = vadd.f32 %v669_v27, %v448_v21  ;;  %v877_v63 = vsel %vm806_vm11, %v1934_v19, 0.0  ;;  %vm1013_vm12 = vcmp.eq.s32.totalorder %v2755_v10, %v1942_v33 }
 0x10f   : > { %1221 = vmatpush.msra.mxu1 %v1150_v15  ;;  %v1084_v62 = vsel %vm1013_vm12, %v1948_v36, 0.0  ;;  %vm1270_vm13 = vcmask 1043456  }
 0x110   : > { %v1116_v11 = vadd.f32 %v1052_v14, %v909_v18  ;;  %v941_v35 = vadd.f32 %v877_v63, %v733_v26 }
 0x112   : > { %1202 = vmatpush.msra.mxu0 %v1116_v11  ;;  %v1148_v6 = vadd.f32 %v1084_v62, %v941_v35 }
 0x113   : > { %1203 = vmatmul.f32.vlgmr.msra.gmra.mxu0 %v2774_v32 }
 0x114   : > { %1222 = vmatpush.msra.mxu1 %v1148_v6 }
 0x115   : > { %1223 = vmatmul.f32.vlgmr.msra.gmra.mxu1 %v2796_v24 }
 0x17f   : > { %v1244_v13 = vpop.f32.mrf.mxu2 }
 0x184   : > { %v1264_v29 = vpop.f32.mrf.mxu3 }
 0x185   : > { %v1265_v19 = vadd.f32 %v1264_v29, %v1244_v13 }
 0x187   : > { %v1269_v36 = vrot.slane %v1265_v19, 4 }
 0x190   : > { %v1204_v33 = vpop.f32.mrf.mxu0 }
 0x192   : > { %v1224_v10 = vpop.f32.mrf.mxu1 }
 0x193   : > { %v1225_v32 = vadd.f32 %v1224_v10, %v1204_v33 }
 0x195   : > { %v1271_v12 = vsel %vm1270_vm13, %v1225_v32, %v1269_v36 }
 0x196   : > { %1273 = vst [vmem:[%s266_s29] sm:$0xff] %v1271_v12 }
 0x197   : > { %1639 = shalt.err (!%p1636_p13)
}
 0x198   : > { %1448 = dma.vmem_to_hbm [thread:$0]  (%p1811_p0), %s1291_s30, 128, %s1293_s4, %s1275_s15  }
 0x199 PF: > { %s1304_s22 = sand.u32 1, %s1678_s12   ;;  %p1462_p4 = pnand %p1415_p3, %p1815_p2 }
 0x19a   : > { %s1305_s8 = scalar_lea.sflag [#allocation4], %s1304_s22 }
 0x19b   : > { %p1463_p5 = pneg %p1462_p4 }
 0x19d   : > { %1673 = dma.done.wait (%p1463_p5), %s1305_s8, 128  }
 0x19e   : > { %1675 = vsyncadd (%p1463_p5), %s1305_s8, 4294967168  ;;  %s20_s17 = sadd.s32 1, %s1698_s17   ;;  %s2931_s12 = smov %s1682_s13 }
 0x19f   : > { %p17_p1 = scmp.ge.s32.totalorder %s20_s17, 4   ;;  %s2932_s13 = smov %s1686_s14 }
 0x1a0   : > { %s2933_s14 = smov %s1775_s25  ;;  %s2934_s15 = smov %s1694_s16 }
 0x1a1   : > { %s2935_s16 = smov %s2937_s18  ;;  %19 = sbr.rel (!%p17_p1) target bundleno = 7 (0x7), region = 94 }
 0x1a6   :  { %1311 = vsyncpa [#allocation3], 1 }
 0x1a7   :  { %1313 = vsyncpa [#allocation3 + $0x1], 1 }
 0x1a8   :  { %1314 = vsyncpa [#allocation6], 1 }
 0x1a9   :  { %1316 = vsyncpa [#allocation6 + $0x1], 1 }
 0x1aa   :  { %1317 = vsyncpa [#allocation4], 1 }
 0x1ab   :  { %1319 = vsyncpa [#allocation4 + $0x1], 1 }

</bundles_post_ra>
